<compile_context>
chip_gen: v5e
topology: v5e:2x2
jax: 0.10.0
libtpu: 0.0.40
codegen_flags: <defaults>
</compile_context>

<pallas_src>
import math
import functools

import numpy as np
import jax
import jax.numpy as jnp
from jax.experimental import pallas as pl
from jax.experimental.pallas import tpu as pltpu


# -----------------------------------------------------------------------------
# Static module configuration (mirrors the PyTorch hyper-parameters; the
# spatial shapes are compile-time constants, like spatial_shapes.tolist()).
# -----------------------------------------------------------------------------
EMBED_DIM = 32
NUM_HEADS = 4
HEAD_DIM = EMBED_DIM // NUM_HEADS               # 8
NUM_LEVELS = 2
NUM_POINTS = 4
SPATIAL_SHAPES = ((8, 8), (4, 4))               # (H, W) per level
LEVEL_SIZES = tuple(h * w for h, w in SPATIAL_SHAPES)
LEVEL_OFFSETS = tuple(int(x) for x in np.cumsum((0,) + LEVEL_SIZES)[:-1])
NUM_VALUE = int(sum(LEVEL_SIZES))               # 80
HEAD_BLOCK = ((NUM_VALUE + 127) // 128) * 128   # 128-lane-aligned per-head block
BATCH = 2
NUM_QUERY = 8


# -----------------------------------------------------------------------------
# The fused Pallas kernel
# -----------------------------------------------------------------------------
def msda_fused_kernel(qa_ref, v_ref, mask_ref, wq_ref, bq_ref, wv_ref, bv_ref,
                      wo_ref, bo_ref, s_ref, cr_ref, g_ref, gt_ref, out_ref,
                      *, B, Q, H, D, L, P, HB):
    f32 = jnp.float32
    BQ = B * Q
    nxy = H * L * P                              # 32
    LH = L * H                                   # 8

    # 1) one packed projection: x/y pixel coordinates (reference-point term,
    #    offset normalisation and grid_sample's -0.5 folded into wq/bq) and
    #    the attention logits.  Column order of each 32-block is (p, l, h).
    qp = jnp.dot(qa_ref[...], wq_ref[...], preferred_element_type=f32) + bq_ref[...]

    # 2) fused per-head softmax over the (level, point) axis.
    #    A single row max is used for all heads (exact softmax for any shift;
    #    safe here since per-head logit spreads are small).
    logits = qp[:, 2 * nxy:3 * nxy]                                  # (BQ, 32)
    m = jnp.max(logits, axis=-1, keepdims=True)
    e = jnp.exp(logits - m)
    denom = jnp.dot(e, g_ref[...], preferred_element_type=f32)       # (BQ, H)
    rinv = pl.reciprocal(denom)                                      # exact
    attn = e * jnp.dot(rinv, gt_ref[...], preferred_element_type=f32)

    # 3) gather-free bilinear sampling weights, vectorized over
    #    (level, head, pixel) lanes.  Lane layout: head h owns lanes
    #    [h*HB, (h+1)*HB); level l occupies [h*HB+off_l, h*HB+off_l+Vl).
    #    s_ref block-broadcasts the 8 per-(l,h) scalars of each point onto
    #    their lane blocks with one MXU matmul (padding lanes stay exactly 0).
    smat = s_ref[...]                                                # (LH, H*HB)
    col = cr_ref[0:1, :]                                             # (1, H*HB)
    row = cr_ref[1:2, :]
    wacc = jnp.zeros((BQ, H * HB), f32)
    for p in range(P):
        xs = qp[:, p * LH:(p + 1) * LH]                              # (BQ, 8)
        ys = qp[:, nxy + p * LH: nxy + (p + 1) * LH]
        aw = attn[:, p * LH:(p + 1) * LH]
        xb = jnp.dot(xs, smat, preferred_element_type=f32)           # (BQ, H*HB)
        yb = jnp.dot(ys, smat, preferred_element_type=f32)
        ab = jnp.dot(aw, smat, preferred_element_type=f32)
        # grid_sample(bilinear, zeros, align_corners=False): weight of sample
        # (x, y) on in-range pixel (r, c) is relu(1-|x-c|) * relu(1-|y-r|).
        wx = jnp.maximum(1.0 - jnp.abs(xb - col), 0.0)
        wy = jnp.maximum(1.0 - jnp.abs(yb - row), 0.0)
        wacc = wacc + ab * wx * wy

    # 4) value projection + key-padding mask (applied post-projection, as in
    #    the PyTorch module).  Computed late to keep its live range short.
    v = (jnp.dot(v_ref[...], wv_ref[...], preferred_element_type=f32)
         + bv_ref[...]) * mask_ref[...]                              # (B*HB, E)

    # 5) per-(batch, head) contraction on 128-lane-aligned static slices with
    #    the output projection folded in per head; lane-dense (BQ, E) stores.
    wo = wo_ref[...]
    bo = bo_ref[...]
    for b in range(B):
        wb = wacc[b * Q:(b + 1) * Q, :]                              # (Q, H*HB)
        vb = v[b * HB:(b + 1) * HB, :]                               # (HB, E)
        acc = jnp.zeros((Q, H * D), f32)
        for h in range(H):
            s_h = jnp.dot(wb[:, h * HB:(h + 1) * HB],
                          vb[:, h * D:(h + 1) * D],
                          preferred_element_type=f32)                # (Q, D)
            acc = acc + jnp.dot(s_h, wo[h * D:(h + 1) * D, :],
                                preferred_element_type=f32)          # (Q, E)
        out_ref[b * Q:(b + 1) * Q, :] = (acc + bo).astype(out_ref.dtype)


def msda_forward(packed, query, reference_points, value, key_padding_mask):
    """Full MultiScaleDeformableAttention forward in a single fused Pallas call."""
    B, Q, E = query.shape
    _, Nv, _ = value.shape
    L, HB = NUM_LEVELS, HEAD_BLOCK
    assert E == EMBED_DIM and Nv == NUM_VALUE

    # wrapper-side layout plumbing: augment query with the flattened reference
    # points; pad each batch's value rows to the 128-lane head block.
    q_aug = jnp.concatenate(
        [query.reshape(B * Q, E),
         reference_points.reshape(B * Q, L * 2).astype(query.dtype)], axis=-1)
    v_pad = jnp.pad(value, ((0, 0), (0, HB - Nv), (0, 0))).reshape(B * HB, E)
    mask = 1.0 - key_padding_mask.astype(jnp.float32)
    mask = jnp.pad(mask, ((0, 0), (0, HB - Nv))).reshape(B * HB, 1)

    kernel = functools.partial(
        msda_fused_kernel, B=B, Q=Q, H=NUM_HEADS, D=HEAD_DIM,
        L=NUM_LEVELS, P=NUM_POINTS, HB=HB)

    vmem = lambda: pl.BlockSpec(memory_space=pltpu.MemorySpace.VMEM)
    out2 = pl.pallas_call(
        kernel,
        out_shape=jax.ShapeDtypeStruct((B * Q, E), jnp.float32),
        in_specs=[vmem() for _ in range(13)],
        out_specs=vmem(),
    )(q_aug, v_pad, mask,
      packed["wq"], packed["bq"], packed["wv"], packed["bv"],
      packed["wo"], packed["bo"],
      packed["smat"], packed["colrow"], packed["gsum"], packed["gbcast"])
    return out2.reshape(B, Q, E)


# -----------------------------------------------------------------------------
# Parameters: original (PyTorch-layout) init + one-time packing into the
# layouts expected by the fused kernel.
# -----------------------------------------------------------------------------
def xavier_uniform(key, out_f, in_f):
    a = math.sqrt(6.0 / (in_f + out_f))
    return jax.random.uniform(key, (out_f, in_f), jnp.float32, -a, a)


def init_params(key):
    """Mirrors MultiScaleDeformableAttention.init_weights (PyTorch layout)."""
    k_vp, k_op = jax.random.split(key, 2)
    H, L, P = NUM_HEADS, NUM_LEVELS, NUM_POINTS

    thetas = jnp.arange(H, dtype=jnp.float32) * (2.0 * math.pi / H)
    grid_init = jnp.stack([jnp.cos(thetas), jnp.sin(thetas)], -1)            # (H, 2)
    grid_init = grid_init / jnp.max(jnp.abs(grid_init), axis=-1, keepdims=True)
    grid_init = jnp.tile(grid_init.reshape(H, 1, 1, 2), (1, L, P, 1))        # (H,L,P,2)
    scale = jnp.arange(1, P + 1, dtype=jnp.float32).reshape(1, 1, P, 1)
    so_bias = (grid_init * scale).reshape(-1)                                # (H*L*P*2,)

    return {
        "so_w": jnp.zeros((H * L * P * 2, EMBED_DIM), jnp.float32),
        "so_b": so_bias,
        "aw_w": jnp.zeros((H * L * P, EMBED_DIM), jnp.float32),
        "aw_b": jnp.zeros((H * L * P,), jnp.float32),
        "vp_w": xavier_uniform(k_vp, EMBED_DIM, EMBED_DIM),
        "vp_b": jnp.zeros((EMBED_DIM,), jnp.float32),
        "op_w": xavier_uniform(k_op, EMBED_DIM, EMBED_DIM),
        "op_b": jnp.zeros((EMBED_DIM,), jnp.float32),
    }


def pack_params(params):
    """One-time repack of PyTorch-layout weights into the fused-kernel layout."""
    H, L, P, E = NUM_HEADS, NUM_LEVELS, NUM_POINTS, EMBED_DIM
    HB = HEAD_BLOCK
    nxy = H * L * P
    so_w = np.asarray(params["so_w"]); so_b = np.asarray(params["so_b"])
    aw_w = np.asarray(params["aw_w"]); aw_b = np.asarray(params["aw_b"])

    # Packed projection: input = [query | ref per level (x,y)]; output columns
    # are [x coords | y coords | attn logits], each block in (p, l, h) order.
    # The -0.5 grid_sample shift goes into the bias; the reference-point rows
    # carry the per-level (W, H) scale.  (The offset normalizer and the
    # loc->pixel scale are both (Wl, Hl) per level, so offsets enter unscaled.)
    wq = np.zeros((E + 2 * L, 3 * nxy), np.float32)
    bq = np.zeros((1, 3 * nxy), np.float32)
    for p in range(P):
        for l, (Hl, Wl) in enumerate(SPATIAL_SHAPES):
            for h in range(H):
                c = p * (L * H) + l * H + h            # packed column (p, l, h)
                r = (h * L + l) * P + p                # PyTorch output row (h, l, p)
                wq[:E, c] = so_w[2 * r + 0]
                wq[E + 2 * l + 0, c] = float(Wl)
                bq[0, c] = so_b[2 * r + 0] - 0.5
                wq[:E, nxy + c] = so_w[2 * r + 1]
                wq[E + 2 * l + 1, nxy + c] = float(Hl)
                bq[0, nxy + c] = so_b[2 * r + 1] - 0.5
                wq[:E, 2 * nxy + c] = aw_w[r]
                bq[0, 2 * nxy + c] = aw_b[r]

    # Block-broadcast matrix: per-(l,h) scalar -> its 128-aligned head block,
    # plus the per-lane pixel (col,row) constants; padding lanes get -1e6 so
    # their bilinear weights are exactly 0 (their attn broadcast is 0 anyway).
    smat = np.zeros((L * H, H * HB), np.float32)
    colrow = np.full((2, H * HB), -1.0e6, np.float32)
    for l, (Hl, Wl) in enumerate(SPATIAL_SHAPES):
        Vl = Hl * Wl
        off = LEVEL_OFFSETS[l]
        pix = np.arange(Vl)
        for h in range(H):
            base = h * HB + off
            smat[l * H + h, base:base + Vl] = 1.0
            colrow[0, base:base + Vl] = pix % Wl
            colrow[1, base:base + Vl] = pix // Wl

    # per-head softmax-sum / reciprocal-broadcast 0/1 matrices (logit column c
    # belongs to head c % H under the (p, l, h) packing).
    gsum = np.zeros((nxy, H), np.float32)
    for c in range(nxy):
        gsum[c, c % H] = 1.0
    gbcast = np.ascontiguousarray(gsum.T)

    return {
        "wq": jnp.asarray(wq), "bq": jnp.asarray(bq),
        "wv": jnp.asarray(np.asarray(params["vp_w"]).T),
        "bv": jnp.asarray(np.asarray(params["vp_b"])[None, :]),
        "wo": jnp.asarray(np.asarray(params["op_w"]).T),
        "bo": jnp.asarray(np.asarray(params["op_b"])[None, :]),
        "smat": jnp.asarray(smat), "colrow": jnp.asarray(colrow),
        "gsum": jnp.asarray(gsum), "gbcast": jnp.asarray(gbcast),
    }


# -----------------------------------------------------------------------------
# Pure-JAX reference of the whole module forward (gather based), for checking.
# -----------------------------------------------------------------------------
def reference_forward(params, query, reference_points, value, key_padding_mask):
    B, Q, E = query.shape
    _, Nv, _ = value.shape
    H, L, P, D = NUM_HEADS, NUM_LEVELS, NUM_POINTS, HEAD_DIM

    v = value @ params["vp_w"].T + params["vp_b"]
    v = jnp.where(key_padding_mask[..., None], 0.0, v)
    v = v.reshape(B, Nv, H, D)

    so = (query @ params["so_w"].T + params["so_b"]).reshape(B, Q, H, L, P, 2)
    aw = (query @ params["aw_w"].T + params["aw_b"]).reshape(B, Q, H, L * P)
    aw = jax.nn.softmax(aw, axis=-1).reshape(B, Q, H, L, P)

    offset_normalizer = jnp.array([[w, h] for (h, w) in SPATIAL_SHAPES], jnp.float32)
    loc = (reference_points[:, :, None, :, None, :]
           + so / offset_normalizer[None, None, None, :, None, :])   # (B,Q,H,L,P,2)

    out = jnp.zeros((B, Q, H, D), jnp.float32)
    start = 0
    for l, (Hl, Wl) in enumerate(SPATIAL_SHAPES):
        Vl = Hl * Wl
        vl = jnp.transpose(v[:, start:start + Vl], (0, 2, 1, 3))     # (B,H,Vl,D)
        x = loc[:, :, :, l, :, 0] * Wl - 0.5                         # (B,Q,H,P)
        y = loc[:, :, :, l, :, 1] * Hl - 0.5
        x0 = jnp.floor(x); y0 = jnp.floor(y)
        aw_l = aw[:, :, :, l, :]
        acc = jnp.zeros((B, Q, H, P, D), jnp.float32)
        for dx in (0.0, 1.0):
            for dy in (0.0, 1.0):
                cx = x0 + dx; cy = y0 + dy
                wgt = (1.0 - jnp.abs(x - cx)) * (1.0 - jnp.abs(y - cy))
                inb = (cx >= 0) & (cx <= Wl - 1) & (cy >= 0) & (cy <= Hl - 1)
                w = jnp.where(inb, wgt, 0.0)
                idx = jnp.clip(cy * Wl + cx, 0, Vl - 1).astype(jnp.int32)
                idx_t = jnp.transpose(idx, (0, 2, 1, 3)).reshape(B, H, Q * P, 1)
                g = jnp.take_along_axis(vl, idx_t, axis=2).reshape(B, H, Q, P, D)
                g = jnp.transpose(g, (0, 2, 1, 3, 4))                # (B,Q,H,P,D)
                acc = acc + g * w[..., None]
        out = out + jnp.sum(acc * aw_l[..., None], axis=3)
        start += Vl

    out = out.reshape(B, Q, E)
    return out @ params["op_w"].T + params["op_b"]


# -----------------------------------------------------------------------------
# Main
# -----------------------------------------------------------------------------
if __name__ == "__main__":
    key = jax.random.PRNGKey(0)
    k_params, k_query, k_value, k_ref, k_n1, k_n2, k_n3 = jax.random.split(key, 7)

    params = init_params(k_params)
    # Perturb the (zero-initialised) offset / attention projections so the
    # sampling and softmax paths are exercised with non-trivial values.
    params["so_w"] = params["so_w"] + 0.3 * jax.random.normal(k_n1, params["so_w"].shape)
    params["aw_w"] = params["aw_w"] + 0.3 * jax.random.normal(k_n2, params["aw_w"].shape)
    params["aw_b"] = params["aw_b"] + 0.1 * jax.random.normal(k_n3, params["aw_b"].shape)
    packed = pack_params(params)

    query = jax.random.normal(k_query, (BATCH, NUM_QUERY, EMBED_DIM), jnp.float32)
    value = jax.random.normal(k_value, (BATCH, NUM_VALUE, EMBED_DIM), jnp.float32)
    reference_points = jax.random.uniform(
        k_ref, (BATCH, NUM_QUERY, NUM_LEVELS, 2), jnp.float32)
    key_padding_mask = jnp.zeros((BATCH, NUM_VALUE), bool).at[1, -4:].set(True)

    fwd = jax.jit(msda_forward)
    out = fwd(packed, query, reference_points, value, key_padding_mask)
    out = jax.block_until_ready(out)

    # correctness check against a pure-JAX reference of the module forward
    ref_out = reference_forward(params, query, reference_points, value,
                                key_padding_mask)
    np.testing.assert_allclose(np.asarray(out), np.asarray(ref_out),
                               rtol=2e-3, atol=1e-4)
    assert out.shape == (BATCH, NUM_QUERY, EMBED_DIM)
    assert bool(jnp.all(jnp.isfinite(out)))

    print("KERNEL_OK")
</pallas_src>

<mosaic_0001>
module attributes {stable_mosaic.version = 11 : i64} {
  func.func @msda_fused_kernel(%arg0: memref<16x36xf32, #tpu.memory_space<vmem>>, %arg1: memref<256x32xf32, #tpu.memory_space<vmem>>, %arg2: memref<256x1xf32, #tpu.memory_space<vmem>>, %arg3: memref<36x96xf32, #tpu.memory_space<vmem>>, %arg4: memref<1x96xf32, #tpu.memory_space<vmem>>, %arg5: memref<32x32xf32, #tpu.memory_space<vmem>>, %arg6: memref<1x32xf32, #tpu.memory_space<vmem>>, %arg7: memref<32x32xf32, #tpu.memory_space<vmem>>, %arg8: memref<1x32xf32, #tpu.memory_space<vmem>>, %arg9: memref<8x512xf32, #tpu.memory_space<vmem>>, %arg10: memref<2x512xf32, #tpu.memory_space<vmem>>, %arg11: memref<32x4xf32, #tpu.memory_space<vmem>>, %arg12: memref<4x32xf32, #tpu.memory_space<vmem>>, %arg13: memref<16x32xf32, #tpu.memory_space<vmem>>) attributes {dimension_semantics = [], scalar_prefetch = 0 : i64, scratch_operands = 0 : i64, tpu.core_type = #tpu.core_type<tc>} {
    %c0 = arith.constant 0 : index
    %c0_0 = arith.constant 0 : index
    %0 = vector.load %arg0[%c0, %c0_0] : memref<16x36xf32, #tpu.memory_space<vmem>>, vector<16x36xf32>
    %c0_1 = arith.constant 0 : index
    %c0_2 = arith.constant 0 : index
    %1 = vector.load %arg3[%c0_1, %c0_2] : memref<36x96xf32, #tpu.memory_space<vmem>>, vector<36x96xf32>
    %cst = arith.constant dense<0.000000e+00> : vector<16x96xf32>
    %2 = tpu.matmul %0, %1, %cst {dimension_numbers = #tpu.dot_dimension_numbers<[1], [0], [0], [1], [0, 0, 1, 1], [], []>} : vector<16x36xf32>, vector<36x96xf32>, vector<16x96xf32> -> vector<16x96xf32>
    %c0_3 = arith.constant 0 : index
    %c0_4 = arith.constant 0 : index
    %3 = vector.load %arg4[%c0_3, %c0_4] : memref<1x96xf32, #tpu.memory_space<vmem>>, vector<1x96xf32>
    %4 = vector.broadcast %3 : vector<1x96xf32> to vector<16x96xf32>
    %5 = arith.addf %2, %4 : vector<16x96xf32>
    %6 = vector.extract_strided_slice %5 {offsets = [0, 64], sizes = [16, 32], strides = [1, 1]} : vector<16x96xf32> to vector<16x32xf32>
    %cst_5 = arith.constant dense<0xFF800000> : vector<16xf32>
    %7 = vector.multi_reduction <maximumf>, %6, %cst_5 [1] : vector<16x32xf32> to vector<16xf32>
    %8 = vector.shape_cast %7 : vector<16xf32> to vector<16x1xf32>
    %9 = vector.broadcast %8 : vector<16x1xf32> to vector<16x32xf32>
    %10 = arith.subf %6, %9 : vector<16x32xf32>
    %11 = math.exp %10 : vector<16x32xf32>
    %c0_6 = arith.constant 0 : index
    %c0_7 = arith.constant 0 : index
    %12 = vector.load %arg11[%c0_6, %c0_7] : memref<32x4xf32, #tpu.memory_space<vmem>>, vector<32x4xf32>
    %cst_8 = arith.constant dense<0.000000e+00> : vector<16x4xf32>
    %13 = tpu.matmul %11, %12, %cst_8 {dimension_numbers = #tpu.dot_dimension_numbers<[1], [0], [0], [1], [0, 0, 1, 1], [], []>} : vector<16x32xf32>, vector<32x4xf32>, vector<16x4xf32> -> vector<16x4xf32>
    %14 = tpu.reciprocal %13 : vector<16x4xf32> -> vector<16x4xf32>
    %c0_9 = arith.constant 0 : index
    %c0_10 = arith.constant 0 : index
    %15 = vector.load %arg12[%c0_9, %c0_10] : memref<4x32xf32, #tpu.memory_space<vmem>>, vector<4x32xf32>
    %cst_11 = arith.constant dense<0.000000e+00> : vector<16x32xf32>
    %16 = tpu.matmul %14, %15, %cst_11 {dimension_numbers = #tpu.dot_dimension_numbers<[1], [0], [0], [1], [0, 0, 1, 1], [], []>} : vector<16x4xf32>, vector<4x32xf32>, vector<16x32xf32> -> vector<16x32xf32>
    %17 = arith.mulf %11, %16 : vector<16x32xf32>
    %c0_12 = arith.constant 0 : index
    %c0_13 = arith.constant 0 : index
    %18 = vector.load %arg9[%c0_12, %c0_13] : memref<8x512xf32, #tpu.memory_space<vmem>>, vector<8x512xf32>
    %c0_14 = arith.constant 0 : index
    %c0_15 = arith.constant 0 : index
    %19 = vector.load %arg10[%c0_14, %c0_15] : memref<2x512xf32, #tpu.memory_space<vmem>>, vector<1x512xf32>
    %c1 = arith.constant 1 : index
    %c0_16 = arith.constant 0 : index
    %20 = vector.load %arg10[%c1, %c0_16] : memref<2x512xf32, #tpu.memory_space<vmem>>, vector<1x512xf32>
    %cst_17 = arith.constant 0.000000e+00 : f32
    %21 = vector.broadcast %cst_17 : f32 to vector<16x512xf32>
    %22 = vector.extract_strided_slice %5 {offsets = [0, 0], sizes = [16, 8], strides = [1, 1]} : vector<16x96xf32> to vector<16x8xf32>
    %23 = vector.extract_strided_slice %5 {offsets = [0, 32], sizes = [16, 8], strides = [1, 1]} : vector<16x96xf32> to vector<16x8xf32>
    %24 = vector.extract_strided_slice %17 {offsets = [0, 0], sizes = [16, 8], strides = [1, 1]} : vector<16x32xf32> to vector<16x8xf32>
    %cst_18 = arith.constant dense<0.000000e+00> : vector<16x512xf32>
    %25 = tpu.matmul %22, %18, %cst_18 {dimension_numbers = #tpu.dot_dimension_numbers<[1], [0], [0], [1], [0, 0, 1, 1], [], []>} : vector<16x8xf32>, vector<8x512xf32>, vector<16x512xf32> -> vector<16x512xf32>
    %cst_19 = arith.constant dense<0.000000e+00> : vector<16x512xf32>
    %26 = tpu.matmul %23, %18, %cst_19 {dimension_numbers = #tpu.dot_dimension_numbers<[1], [0], [0], [1], [0, 0, 1, 1], [], []>} : vector<16x8xf32>, vector<8x512xf32>, vector<16x512xf32> -> vector<16x512xf32>
    %cst_20 = arith.constant dense<0.000000e+00> : vector<16x512xf32>
    %27 = tpu.matmul %24, %18, %cst_20 {dimension_numbers = #tpu.dot_dimension_numbers<[1], [0], [0], [1], [0, 0, 1, 1], [], []>} : vector<16x8xf32>, vector<8x512xf32>, vector<16x512xf32> -> vector<16x512xf32>
    %28 = vector.broadcast %19 : vector<1x512xf32> to vector<16x512xf32>
    %29 = arith.subf %25, %28 : vector<16x512xf32>
    %30 = math.absf %29 : vector<16x512xf32>
    %cst_21 = arith.constant 1.000000e+00 : f32
    %31 = vector.broadcast %cst_21 : f32 to vector<16x512xf32>
    %32 = arith.subf %31, %30 : vector<16x512xf32>
    %cst_22 = arith.constant 0.000000e+00 : f32
    %33 = vector.broadcast %cst_22 : f32 to vector<16x512xf32>
    %34 = arith.maximumf %32, %33 : vector<16x512xf32>
    %35 = vector.broadcast %20 : vector<1x512xf32> to vector<16x512xf32>
    %36 = arith.subf %26, %35 : vector<16x512xf32>
    %37 = math.absf %36 : vector<16x512xf32>
    %cst_23 = arith.constant 1.000000e+00 : f32
    %38 = vector.broadcast %cst_23 : f32 to vector<16x512xf32>
    %39 = arith.subf %38, %37 : vector<16x512xf32>
    %cst_24 = arith.constant 0.000000e+00 : f32
    %40 = vector.broadcast %cst_24 : f32 to vector<16x512xf32>
    %41 = arith.maximumf %39, %40 : vector<16x512xf32>
    %42 = arith.mulf %27, %34 : vector<16x512xf32>
    %43 = arith.mulf %42, %41 : vector<16x512xf32>
    %44 = arith.addf %21, %43 : vector<16x512xf32>
    %45 = vector.extract_strided_slice %5 {offsets = [0, 8], sizes = [16, 8], strides = [1, 1]} : vector<16x96xf32> to vector<16x8xf32>
    %46 = vector.extract_strided_slice %5 {offsets = [0, 40], sizes = [16, 8], strides = [1, 1]} : vector<16x96xf32> to vector<16x8xf32>
    %47 = vector.extract_strided_slice %17 {offsets = [0, 8], sizes = [16, 8], strides = [1, 1]} : vector<16x32xf32> to vector<16x8xf32>
    %cst_25 = arith.constant dense<0.000000e+00> : vector<16x512xf32>
    %48 = tpu.matmul %45, %18, %cst_25 {dimension_numbers = #tpu.dot_dimension_numbers<[1], [0], [0], [1], [0, 0, 1, 1], [], []>} : vector<16x8xf32>, vector<8x512xf32>, vector<16x512xf32> -> vector<16x512xf32>
    %cst_26 = arith.constant dense<0.000000e+00> : vector<16x512xf32>
    %49 = tpu.matmul %46, %18, %cst_26 {dimension_numbers = #tpu.dot_dimension_numbers<[1], [0], [0], [1], [0, 0, 1, 1], [], []>} : vector<16x8xf32>, vector<8x512xf32>, vector<16x512xf32> -> vector<16x512xf32>
    %cst_27 = arith.constant dense<0.000000e+00> : vector<16x512xf32>
    %50 = tpu.matmul %47, %18, %cst_27 {dimension_numbers = #tpu.dot_dimension_numbers<[1], [0], [0], [1], [0, 0, 1, 1], [], []>} : vector<16x8xf32>, vector<8x512xf32>, vector<16x512xf32> -> vector<16x512xf32>
    %51 = vector.broadcast %19 : vector<1x512xf32> to vector<16x512xf32>
    %52 = arith.subf %48, %51 : vector<16x512xf32>
    %53 = math.absf %52 : vector<16x512xf32>
    %cst_28 = arith.constant 1.000000e+00 : f32
    %54 = vector.broadcast %cst_28 : f32 to vector<16x512xf32>
    %55 = arith.subf %54, %53 : vector<16x512xf32>
    %cst_29 = arith.constant 0.000000e+00 : f32
    %56 = vector.broadcast %cst_29 : f32 to vector<16x512xf32>
    %57 = arith.maximumf %55, %56 : vector<16x512xf32>
    %58 = vector.broadcast %20 : vector<1x512xf32> to vector<16x512xf32>
    %59 = arith.subf %49, %58 : vector<16x512xf32>
    %60 = math.absf %59 : vector<16x512xf32>
    %cst_30 = arith.constant 1.000000e+00 : f32
    %61 = vector.broadcast %cst_30 : f32 to vector<16x512xf32>
    %62 = arith.subf %61, %60 : vector<16x512xf32>
    %cst_31 = arith.constant 0.000000e+00 : f32
    %63 = vector.broadcast %cst_31 : f32 to vector<16x512xf32>
    %64 = arith.maximumf %62, %63 : vector<16x512xf32>
    %65 = arith.mulf %50, %57 : vector<16x512xf32>
    %66 = arith.mulf %65, %64 : vector<16x512xf32>
    %67 = arith.addf %44, %66 : vector<16x512xf32>
    %68 = vector.extract_strided_slice %5 {offsets = [0, 16], sizes = [16, 8], strides = [1, 1]} : vector<16x96xf32> to vector<16x8xf32>
    %69 = vector.extract_strided_slice %5 {offsets = [0, 48], sizes = [16, 8], strides = [1, 1]} : vector<16x96xf32> to vector<16x8xf32>
    %70 = vector.extract_strided_slice %17 {offsets = [0, 16], sizes = [16, 8], strides = [1, 1]} : vector<16x32xf32> to vector<16x8xf32>
    %cst_32 = arith.constant dense<0.000000e+00> : vector<16x512xf32>
    %71 = tpu.matmul %68, %18, %cst_32 {dimension_numbers = #tpu.dot_dimension_numbers<[1], [0], [0], [1], [0, 0, 1, 1], [], []>} : vector<16x8xf32>, vector<8x512xf32>, vector<16x512xf32> -> vector<16x512xf32>
    %cst_33 = arith.constant dense<0.000000e+00> : vector<16x512xf32>
    %72 = tpu.matmul %69, %18, %cst_33 {dimension_numbers = #tpu.dot_dimension_numbers<[1], [0], [0], [1], [0, 0, 1, 1], [], []>} : vector<16x8xf32>, vector<8x512xf32>, vector<16x512xf32> -> vector<16x512xf32>
    %cst_34 = arith.constant dense<0.000000e+00> : vector<16x512xf32>
    %73 = tpu.matmul %70, %18, %cst_34 {dimension_numbers = #tpu.dot_dimension_numbers<[1], [0], [0], [1], [0, 0, 1, 1], [], []>} : vector<16x8xf32>, vector<8x512xf32>, vector<16x512xf32> -> vector<16x512xf32>
    %74 = vector.broadcast %19 : vector<1x512xf32> to vector<16x512xf32>
    %75 = arith.subf %71, %74 : vector<16x512xf32>
    %76 = math.absf %75 : vector<16x512xf32>
    %cst_35 = arith.constant 1.000000e+00 : f32
    %77 = vector.broadcast %cst_35 : f32 to vector<16x512xf32>
    %78 = arith.subf %77, %76 : vector<16x512xf32>
    %cst_36 = arith.constant 0.000000e+00 : f32
    %79 = vector.broadcast %cst_36 : f32 to vector<16x512xf32>
    %80 = arith.maximumf %78, %79 : vector<16x512xf32>
    %81 = vector.broadcast %20 : vector<1x512xf32> to vector<16x512xf32>
    %82 = arith.subf %72, %81 : vector<16x512xf32>
    %83 = math.absf %82 : vector<16x512xf32>
    %cst_37 = arith.constant 1.000000e+00 : f32
    %84 = vector.broadcast %cst_37 : f32 to vector<16x512xf32>
    %85 = arith.subf %84, %83 : vector<16x512xf32>
    %cst_38 = arith.constant 0.000000e+00 : f32
    %86 = vector.broadcast %cst_38 : f32 to vector<16x512xf32>
    %87 = arith.maximumf %85, %86 : vector<16x512xf32>
    %88 = arith.mulf %73, %80 : vector<16x512xf32>
    %89 = arith.mulf %88, %87 : vector<16x512xf32>
    %90 = arith.addf %67, %89 : vector<16x512xf32>
    %91 = vector.extract_strided_slice %5 {offsets = [0, 24], sizes = [16, 8], strides = [1, 1]} : vector<16x96xf32> to vector<16x8xf32>
    %92 = vector.extract_strided_slice %5 {offsets = [0, 56], sizes = [16, 8], strides = [1, 1]} : vector<16x96xf32> to vector<16x8xf32>
    %93 = vector.extract_strided_slice %17 {offsets = [0, 24], sizes = [16, 8], strides = [1, 1]} : vector<16x32xf32> to vector<16x8xf32>
    %cst_39 = arith.constant dense<0.000000e+00> : vector<16x512xf32>
    %94 = tpu.matmul %91, %18, %cst_39 {dimension_numbers = #tpu.dot_dimension_numbers<[1], [0], [0], [1], [0, 0, 1, 1], [], []>} : vector<16x8xf32>, vector<8x512xf32>, vector<16x512xf32> -> vector<16x512xf32>
    %cst_40 = arith.constant dense<0.000000e+00> : vector<16x512xf32>
    %95 = tpu.matmul %92, %18, %cst_40 {dimension_numbers = #tpu.dot_dimension_numbers<[1], [0], [0], [1], [0, 0, 1, 1], [], []>} : vector<16x8xf32>, vector<8x512xf32>, vector<16x512xf32> -> vector<16x512xf32>
    %cst_41 = arith.constant dense<0.000000e+00> : vector<16x512xf32>
    %96 = tpu.matmul %93, %18, %cst_41 {dimension_numbers = #tpu.dot_dimension_numbers<[1], [0], [0], [1], [0, 0, 1, 1], [], []>} : vector<16x8xf32>, vector<8x512xf32>, vector<16x512xf32> -> vector<16x512xf32>
    %97 = vector.broadcast %19 : vector<1x512xf32> to vector<16x512xf32>
    %98 = arith.subf %94, %97 : vector<16x512xf32>
    %99 = math.absf %98 : vector<16x512xf32>
    %cst_42 = arith.constant 1.000000e+00 : f32
    %100 = vector.broadcast %cst_42 : f32 to vector<16x512xf32>
    %101 = arith.subf %100, %99 : vector<16x512xf32>
    %cst_43 = arith.constant 0.000000e+00 : f32
    %102 = vector.broadcast %cst_43 : f32 to vector<16x512xf32>
    %103 = arith.maximumf %101, %102 : vector<16x512xf32>
    %104 = vector.broadcast %20 : vector<1x512xf32> to vector<16x512xf32>
    %105 = arith.subf %95, %104 : vector<16x512xf32>
    %106 = math.absf %105 : vector<16x512xf32>
    %cst_44 = arith.constant 1.000000e+00 : f32
    %107 = vector.broadcast %cst_44 : f32 to vector<16x512xf32>
    %108 = arith.subf %107, %106 : vector<16x512xf32>
    %cst_45 = arith.constant 0.000000e+00 : f32
    %109 = vector.broadcast %cst_45 : f32 to vector<16x512xf32>
    %110 = arith.maximumf %108, %109 : vector<16x512xf32>
    %111 = arith.mulf %96, %103 : vector<16x512xf32>
    %112 = arith.mulf %111, %110 : vector<16x512xf32>
    %113 = arith.addf %90, %112 : vector<16x512xf32>
    %c0_46 = arith.constant 0 : index
    %c0_47 = arith.constant 0 : index
    %114 = vector.load %arg1[%c0_46, %c0_47] : memref<256x32xf32, #tpu.memory_space<vmem>>, vector<256x32xf32>
    %c0_48 = arith.constant 0 : index
    %c0_49 = arith.constant 0 : index
    %115 = vector.load %arg5[%c0_48, %c0_49] : memref<32x32xf32, #tpu.memory_space<vmem>>, vector<32x32xf32>
    %cst_50 = arith.constant dense<0.000000e+00> : vector<256x32xf32>
    %116 = tpu.matmul %114, %115, %cst_50 {dimension_numbers = #tpu.dot_dimension_numbers<[1], [0], [0], [1], [0, 0, 1, 1], [], []>} : vector<256x32xf32>, vector<32x32xf32>, vector<256x32xf32> -> vector<256x32xf32>
    %c0_51 = arith.constant 0 : index
    %c0_52 = arith.constant 0 : index
    %117 = vector.load %arg6[%c0_51, %c0_52] : memref<1x32xf32, #tpu.memory_space<vmem>>, vector<1x32xf32>
    %118 = vector.broadcast %117 : vector<1x32xf32> to vector<256x32xf32>
    %119 = arith.addf %116, %118 : vector<256x32xf32>
    %c0_53 = arith.constant 0 : index
    %c0_54 = arith.constant 0 : index
    %120 = vector.load %arg2[%c0_53, %c0_54] : memref<256x1xf32, #tpu.memory_space<vmem>>, vector<256x1xf32>
    %121 = vector.broadcast %120 : vector<256x1xf32> to vector<256x32xf32>
    %122 = arith.mulf %119, %121 : vector<256x32xf32>
    %c0_55 = arith.constant 0 : index
    %c0_56 = arith.constant 0 : index
    %123 = vector.load %arg7[%c0_55, %c0_56] : memref<32x32xf32, #tpu.memory_space<vmem>>, vector<32x32xf32>
    %c0_57 = arith.constant 0 : index
    %c0_58 = arith.constant 0 : index
    %124 = vector.load %arg8[%c0_57, %c0_58] : memref<1x32xf32, #tpu.memory_space<vmem>>, vector<1x32xf32>
    %125 = vector.extract_strided_slice %113 {offsets = [0, 0], sizes = [8, 512], strides = [1, 1]} : vector<16x512xf32> to vector<8x512xf32>
    %126 = vector.extract_strided_slice %122 {offsets = [0, 0], sizes = [128, 32], strides = [1, 1]} : vector<256x32xf32> to vector<128x32xf32>
    %cst_59 = arith.constant 0.000000e+00 : f32
    %127 = vector.broadcast %cst_59 : f32 to vector<8x32xf32>
    %128 = vector.extract_strided_slice %125 {offsets = [0, 0], sizes = [8, 128], strides = [1, 1]} : vector<8x512xf32> to vector<8x128xf32>
    %129 = vector.extract_strided_slice %126 {offsets = [0, 0], sizes = [128, 8], strides = [1, 1]} : vector<128x32xf32> to vector<128x8xf32>
    %cst_60 = arith.constant dense<0.000000e+00> : vector<8x8xf32>
    %130 = tpu.matmul %128, %129, %cst_60 {dimension_numbers = #tpu.dot_dimension_numbers<[1], [0], [0], [1], [0, 0, 1, 1], [], []>} : vector<8x128xf32>, vector<128x8xf32>, vector<8x8xf32> -> vector<8x8xf32>
    %131 = vector.extract_strided_slice %123 {offsets = [0, 0], sizes = [8, 32], strides = [1, 1]} : vector<32x32xf32> to vector<8x32xf32>
    %cst_61 = arith.constant dense<0.000000e+00> : vector<8x32xf32>
    %132 = tpu.matmul %130, %131, %cst_61 {dimension_numbers = #tpu.dot_dimension_numbers<[1], [0], [0], [1], [0, 0, 1, 1], [], []>} : vector<8x8xf32>, vector<8x32xf32>, vector<8x32xf32> -> vector<8x32xf32>
    %133 = arith.addf %127, %132 : vector<8x32xf32>
    %134 = vector.extract_strided_slice %125 {offsets = [0, 128], sizes = [8, 128], strides = [1, 1]} : vector<8x512xf32> to vector<8x128xf32>
    %135 = vector.extract_strided_slice %126 {offsets = [0, 8], sizes = [128, 8], strides = [1, 1]} : vector<128x32xf32> to vector<128x8xf32>
    %cst_62 = arith.constant dense<0.000000e+00> : vector<8x8xf32>
    %136 = tpu.matmul %134, %135, %cst_62 {dimension_numbers = #tpu.dot_dimension_numbers<[1], [0], [0], [1], [0, 0, 1, 1], [], []>} : vector<8x128xf32>, vector<128x8xf32>, vector<8x8xf32> -> vector<8x8xf32>
    %137 = vector.extract_strided_slice %123 {offsets = [8, 0], sizes = [8, 32], strides = [1, 1]} : vector<32x32xf32> to vector<8x32xf32>
    %cst_63 = arith.constant dense<0.000000e+00> : vector<8x32xf32>
    %138 = tpu.matmul %136, %137, %cst_63 {dimension_numbers = #tpu.dot_dimension_numbers<[1], [0], [0], [1], [0, 0, 1, 1], [], []>} : vector<8x8xf32>, vector<8x32xf32>, vector<8x32xf32> -> vector<8x32xf32>
    %139 = arith.addf %133, %138 : vector<8x32xf32>
    %140 = vector.extract_strided_slice %125 {offsets = [0, 256], sizes = [8, 128], strides = [1, 1]} : vector<8x512xf32> to vector<8x128xf32>
    %141 = vector.extract_strided_slice %126 {offsets = [0, 16], sizes = [128, 8], strides = [1, 1]} : vector<128x32xf32> to vector<128x8xf32>
    %cst_64 = arith.constant dense<0.000000e+00> : vector<8x8xf32>
    %142 = tpu.matmul %140, %141, %cst_64 {dimension_numbers = #tpu.dot_dimension_numbers<[1], [0], [0], [1], [0, 0, 1, 1], [], []>} : vector<8x128xf32>, vector<128x8xf32>, vector<8x8xf32> -> vector<8x8xf32>
    %143 = vector.extract_strided_slice %123 {offsets = [16, 0], sizes = [8, 32], strides = [1, 1]} : vector<32x32xf32> to vector<8x32xf32>
    %cst_65 = arith.constant dense<0.000000e+00> : vector<8x32xf32>
    %144 = tpu.matmul %142, %143, %cst_65 {dimension_numbers = #tpu.dot_dimension_numbers<[1], [0], [0], [1], [0, 0, 1, 1], [], []>} : vector<8x8xf32>, vector<8x32xf32>, vector<8x32xf32> -> vector<8x32xf32>
    %145 = arith.addf %139, %144 : vector<8x32xf32>
    %146 = vector.extract_strided_slice %125 {offsets = [0, 384], sizes = [8, 128], strides = [1, 1]} : vector<8x512xf32> to vector<8x128xf32>
    %147 = vector.extract_strided_slice %126 {offsets = [0, 24], sizes = [128, 8], strides = [1, 1]} : vector<128x32xf32> to vector<128x8xf32>
    %cst_66 = arith.constant dense<0.000000e+00> : vector<8x8xf32>
    %148 = tpu.matmul %146, %147, %cst_66 {dimension_numbers = #tpu.dot_dimension_numbers<[1], [0], [0], [1], [0, 0, 1, 1], [], []>} : vector<8x128xf32>, vector<128x8xf32>, vector<8x8xf32> -> vector<8x8xf32>
    %149 = vector.extract_strided_slice %123 {offsets = [24, 0], sizes = [8, 32], strides = [1, 1]} : vector<32x32xf32> to vector<8x32xf32>
    %cst_67 = arith.constant dense<0.000000e+00> : vector<8x32xf32>
    %150 = tpu.matmul %148, %149, %cst_67 {dimension_numbers = #tpu.dot_dimension_numbers<[1], [0], [0], [1], [0, 0, 1, 1], [], []>} : vector<8x8xf32>, vector<8x32xf32>, vector<8x32xf32> -> vector<8x32xf32>
    %151 = arith.addf %145, %150 : vector<8x32xf32>
    %152 = vector.broadcast %124 : vector<1x32xf32> to vector<8x32xf32>
    %153 = arith.addf %151, %152 : vector<8x32xf32>
    %c0_68 = arith.constant 0 : index
    %c0_69 = arith.constant 0 : index
    %154 = vector.load %arg13[%c0_68, %c0_69] : memref<16x32xf32, #tpu.memory_space<vmem>>, vector<8x32xf32>
    tpu.vector_store %arg13[%c0_68, %c0_69], %153 {strides = array<i32>} : memref<16x32xf32, #tpu.memory_space<vmem>>, vector<8x32xf32>,
    %155 = vector.extract_strided_slice %113 {offsets = [8, 0], sizes = [8, 512], strides = [1, 1]} : vector<16x512xf32> to vector<8x512xf32>
    %156 = vector.extract_strided_slice %122 {offsets = [128, 0], sizes = [128, 32], strides = [1, 1]} : vector<256x32xf32> to vector<128x32xf32>
    %cst_70 = arith.constant 0.000000e+00 : f32
    %157 = vector.broadcast %cst_70 : f32 to vector<8x32xf32>
    %158 = vector.extract_strided_slice %155 {offsets = [0, 0], sizes = [8, 128], strides = [1, 1]} : vector<8x512xf32> to vector<8x128xf32>
    %159 = vector.extract_strided_slice %156 {offsets = [0, 0], sizes = [128, 8], strides = [1, 1]} : vector<128x32xf32> to vector<128x8xf32>
    %cst_71 = arith.constant dense<0.000000e+00> : vector<8x8xf32>
    %160 = tpu.matmul %158, %159, %cst_71 {dimension_numbers = #tpu.dot_dimension_numbers<[1], [0], [0], [1], [0, 0, 1, 1], [], []>} : vector<8x128xf32>, vector<128x8xf32>, vector<8x8xf32> -> vector<8x8xf32>
    %161 = vector.extract_strided_slice %123 {offsets = [0, 0], sizes = [8, 32], strides = [1, 1]} : vector<32x32xf32> to vector<8x32xf32>
    %cst_72 = arith.constant dense<0.000000e+00> : vector<8x32xf32>
    %162 = tpu.matmul %160, %161, %cst_72 {dimension_numbers = #tpu.dot_dimension_numbers<[1], [0], [0], [1], [0, 0, 1, 1], [], []>} : vector<8x8xf32>, vector<8x32xf32>, vector<8x32xf32> -> vector<8x32xf32>
    %163 = arith.addf %157, %162 : vector<8x32xf32>
    %164 = vector.extract_strided_slice %155 {offsets = [0, 128], sizes = [8, 128], strides = [1, 1]} : vector<8x512xf32> to vector<8x128xf32>
    %165 = vector.extract_strided_slice %156 {offsets = [0, 8], sizes = [128, 8], strides = [1, 1]} : vector<128x32xf32> to vector<128x8xf32>
    %cst_73 = arith.constant dense<0.000000e+00> : vector<8x8xf32>
    %166 = tpu.matmul %164, %165, %cst_73 {dimension_numbers = #tpu.dot_dimension_numbers<[1], [0], [0], [1], [0, 0, 1, 1], [], []>} : vector<8x128xf32>, vector<128x8xf32>, vector<8x8xf32> -> vector<8x8xf32>
    %167 = vector.extract_strided_slice %123 {offsets = [8, 0], sizes = [8, 32], strides = [1, 1]} : vector<32x32xf32> to vector<8x32xf32>
    %cst_74 = arith.constant dense<0.000000e+00> : vector<8x32xf32>
    %168 = tpu.matmul %166, %167, %cst_74 {dimension_numbers = #tpu.dot_dimension_numbers<[1], [0], [0], [1], [0, 0, 1, 1], [], []>} : vector<8x8xf32>, vector<8x32xf32>, vector<8x32xf32> -> vector<8x32xf32>
    %169 = arith.addf %163, %168 : vector<8x32xf32>
    %170 = vector.extract_strided_slice %155 {offsets = [0, 256], sizes = [8, 128], strides = [1, 1]} : vector<8x512xf32> to vector<8x128xf32>
    %171 = vector.extract_strided_slice %156 {offsets = [0, 16], sizes = [128, 8], strides = [1, 1]} : vector<128x32xf32> to vector<128x8xf32>
    %cst_75 = arith.constant dense<0.000000e+00> : vector<8x8xf32>
    %172 = tpu.matmul %170, %171, %cst_75 {dimension_numbers = #tpu.dot_dimension_numbers<[1], [0], [0], [1], [0, 0, 1, 1], [], []>} : vector<8x128xf32>, vector<128x8xf32>, vector<8x8xf32> -> vector<8x8xf32>
    %173 = vector.extract_strided_slice %123 {offsets = [16, 0], sizes = [8, 32], strides = [1, 1]} : vector<32x32xf32> to vector<8x32xf32>
    %cst_76 = arith.constant dense<0.000000e+00> : vector<8x32xf32>
    %174 = tpu.matmul %172, %173, %cst_76 {dimension_numbers = #tpu.dot_dimension_numbers<[1], [0], [0], [1], [0, 0, 1, 1], [], []>} : vector<8x8xf32>, vector<8x32xf32>, vector<8x32xf32> -> vector<8x32xf32>
    %175 = arith.addf %169, %174 : vector<8x32xf32>
    %176 = vector.extract_strided_slice %155 {offsets = [0, 384], sizes = [8, 128], strides = [1, 1]} : vector<8x512xf32> to vector<8x128xf32>
    %177 = vector.extract_strided_slice %156 {offsets = [0, 24], sizes = [128, 8], strides = [1, 1]} : vector<128x32xf32> to vector<128x8xf32>
    %cst_77 = arith.constant dense<0.000000e+00> : vector<8x8xf32>
    %178 = tpu.matmul %176, %177, %cst_77 {dimension_numbers = #tpu.dot_dimension_numbers<[1], [0], [0], [1], [0, 0, 1, 1], [], []>} : vector<8x128xf32>, vector<128x8xf32>, vector<8x8xf32> -> vector<8x8xf32>
    %179 = vector.extract_strided_slice %123 {offsets = [24, 0], sizes = [8, 32], strides = [1, 1]} : vector<32x32xf32> to vector<8x32xf32>
    %cst_78 = arith.constant dense<0.000000e+00> : vector<8x32xf32>
    %180 = tpu.matmul %178, %179, %cst_78 {dimension_numbers = #tpu.dot_dimension_numbers<[1], [0], [0], [1], [0, 0, 1, 1], [], []>} : vector<8x8xf32>, vector<8x32xf32>, vector<8x32xf32> -> vector<8x32xf32>
    %181 = arith.addf %175, %180 : vector<8x32xf32>
    %182 = vector.broadcast %124 : vector<1x32xf32> to vector<8x32xf32>
    %183 = arith.addf %181, %182 : vector<8x32xf32>
    %c8 = arith.constant 8 : index
    %c0_79 = arith.constant 0 : index
    %184 = vector.load %arg13[%c8, %c0_79] : memref<16x32xf32, #tpu.memory_space<vmem>>, vector<8x32xf32>
    tpu.vector_store %arg13[%c8, %c0_79], %183 {strides = array<i32>} : memref<16x32xf32, #tpu.memory_space<vmem>>, vector<8x32xf32>,
    return
  }
}

</mosaic_0001>

<bundles_post_ra>
// kernel: msda_forward.1
= control target key start
LH: loop header
LB: loop body
LE: loop exit
PB: predicated region body
PF: predicated region fallthrough
CT: control target
= control target key end

     0   :  { %vm63_vm0 = vcmask 1043456   ;;  %s4815_s0 = inlined_call_operand.vmem [shape: f32[16,36], index: 0, kind: input, shape index: {}]   ;;  %s4816_s1 = inlined_call_operand.vmem [shape: f32[256,32], index: 1, kind: input, shape index: {}]   ;;  %s4817_s2 = inlined_call_operand.vmem [shape: f32[256,1], index: 2, kind: input, shape index: {}]   ;;  %s4818_s3 = inlined_call_operand.vmem [shape: f32[36,96], index: 3, kind: input, shape index: {}]   ;;  %s4819_s4 = inlined_call_operand.vmem [shape: f32[1,96], index: 4, kind: input, shape index: {}]   ;;  %s4820_s5 = inlined_call_operand.vmem [shape: f32[32,32], index: 5, kind: input, shape index: {}]   ;;  %s4821_s6 = inlined_call_operand.vmem [shape: f32[1,32], index: 6, kind: input, shape index: {}]   ;;  %s4822_s7 = inlined_call_operand.vmem [shape: f32[32,32], index: 7, kind: input, shape index: {}]   ;;  %s4823_s8 = inlined_call_operand.vmem [shape: f32[1,32], index: 8, kind: input, shape index: {}]   ;;  %s4824_s9 = inlined_call_operand.vmem [shape: f32[8,512], index: 9, kind: input, shape index: {}]   ;;  %s4825_s10 = inlined_call_operand.vmem [shape: f32[2,512], index: 10, kind: input, shape index: {}]   ;;  %s4826_s11 = inlined_call_operand.vmem [shape: f32[32,4], index: 11, kind: input, shape index: {}]   ;;  %s4827_s12 = inlined_call_operand.vmem [shape: f32[4,32], index: 12, kind: input, shape index: {}]   ;;  %s4828_s13 = inlined_call_operand.hbm [shape: f32[16,32], index: 13, kind: output, shape index: {}]  }
   0x1   :  { %v51_v0 = vld [vmem:[%s4818_s3 + $0x20] sm:$0xf]  ;;  %v50_v1 = vld [vmem:[%s4818_s3 + $0x18] sm:$0xff]  ;;  %v49_v2 = vld [vmem:[%s4818_s3 + $0x10] sm:$0xff] }
   0x2   :  { %2962 = vmatpush.msk.msra.mxu0 %vm63_vm0, %v51_v0 }
   0x4   :  { %79 = vmatpush.msra.mxu0 %v50_v1 }
   0x5   :  { %18 = vsyncpa [#allocation3], 0  ;;  %v48_v3 = vld [vmem:[%s4818_s3 + $0x8] sm:$0xff]  ;;  %v47_v4 = vld [vmem:[%s4818_s3] sm:$0xff]  ;;  %vm56_vm1 = vcmask 293888   ;;  %vm220_vm2 = vcmask 64512  }
   0x6   :  { %80 = vmatpush.msra.mxu0 %v49_v2  ;;  %v45_v5 = vld [vmem:[%s4815_s0] sm:$0xff]  ;;  %v46_v6 = vld [vmem:[%s4815_s0 + $0x8] sm:$0xff]  ;;  %v3529_v8 = vld [vmem:[%s4824_s9 + $0x10] sm:$0xff]  ;;  %vm90_vm3 = vcmask 785920   ;;  %vm113_vm4 = vcmask 261120   ;;  %vm170_vm8 = vcmask 31744  }
   0x7   :  { %v3523_v7 = vld [vmem:[%s4824_s9] sm:$0xff]  ;;  %v3540_v12 = vld [vmem:[%s4824_s9 + $0x18] sm:$0xff]  ;;  %v105_v26 = vld [vmem:[%s4826_s11 + $0x10] sm:$0xff]  ;;  %s3416_s22 = smov 56   ;;  %s3417_s23 = smov 112  }
   0x8   :  { %81 = vmatpush.msra.mxu0 %v48_v3  ;;  %242 = vmatpush.msra.mxu3 %v3523_v7  ;;  %v3375_v9 = vld [vmem:[%s4819_s4] ss:$0 sm:$0xff]  ;;  %s3413_s4 = smov 64   ;;  %v106_v25 = vld [vmem:[%s4826_s11 + $0x18] sm:$0xff]  ;;  %v104_v27 = vld [vmem:[%s4826_s11 + $0x8] sm:$0xff]  ;;  %s3418_s3 = smov 48  }
   0x9   :  { %130 = vmatpush.msra.mxu1 %v106_v25  ;;  %v103_v28 = vld [vmem:[%s4826_s11] sm:$0xff]  ;;  %v3597_v32 = vld [vmem:[%s4824_s9 + $0x8] sm:$0xff]  ;;  %s3414_s9 = smov 120   ;;  %s3419_s24 = smov 80   ;;  %v2046_v25 = vld [vmem:[%s4817_s2 + $0x30] sm:$0xff] }
   0xa   :  { %82 = vmatpush.msra.mxu0 %v47_v4  ;;  %288 = vmatpush.msrb.mxu3 %v3529_v8  ;;  %v169_v31 = vld [vmem:[%s4827_s12] sm:$0xf]  ;;  %s3415_s12 = smov 88   ;;  %s3420_s25 = smov 104  }
   0xb   :  { %2963 = vmatmul.msk.f32.vlgmr.msra.gmra.mxu0 %vm56_vm1, %v45_v5  ;;  %131 = vmatpush.msra.mxu1 %v105_v26  ;;  %s3421_s26 = smov 40   ;;  %s3422_s0 = smov 72  }
   0xc   :  { %2967 = vmatpush.msk.msrb.mxu0 %vm63_vm0, %v169_v31  ;;  %3107 = vmatpush.msk.msra.mxu2 %vm63_vm0, %v169_v31  ;;  %s3423_s27 = smov 96   ;;  %v2047_v31 = vld [vmem:[%s4817_s2 + $0x38] sm:$0xff]  ;;  %s3427_s28 = smov 8  }
   0xd   :  { %132 = vmatpush.msra.mxu1 %v104_v27  ;;  %v3780_v27 = vld [vmem:[%s4820_s5 + $0x18] sm:$0xff] }
   0xe   :  { %444 = vmatpush.msra.mxu0 %v3523_v7  ;;  %265 = vmatpush.msrb.mxu2 %v3597_v32 }
   0xf   :  { %133 = vmatpush.msra.mxu1 %v103_v28 }
  0x11   :  { %311 = vmatpush.msrb.mxu1 %v3540_v12 }
  0x13   :  { %2964 = vmatmul.msk.f32.gmra.mxu0 %vm56_vm1, %v46_v6 }
  0x88   :  { %v84_v10 = vpop.f32.mrf.mxu0 }
  0x89   :  { %v3535_v11 = vadd.f32 %v3375_v9, %v84_v10 }
  0x8b   :  { %2971 = vmatmul.msk.f32.vlgmr.msra.gmra.mxu3 %vm220_vm2, %v3535_v11  ;;  %v91_v13 = vsel %vm90_vm3, %v3535_v11, -inf }
  0x8c   :  { %92 = vmax.xlane.f32.xlu0 %v91_v13  ;;  %3108 = vmatpush.msra.mxu3 %v3540_v12 }
  0x90   :  { %v87_v14 = vpop.f32.mrf.mxu0 }
  0x91   :  { %v3546_v15 = vadd.f32 %v3375_v9, %v87_v14 }
  0x93   :  { %2972 = vmatmul.msk.f32.gmra.mxu3 %vm220_vm2, %v3546_v15  ;;  %v94_v16 = vsel %vm90_vm3, %v3546_v15, -inf }
  0x94   :  { %95 = vmax.xlane.f32.xlu0 %v94_v16 }
  0x9b   :  { %2975 = vmatmul.msk.f32.vlgmr.msrb.gmra.mxu3 %vm220_vm2, %v3535_v11 }
  0x9c   :  { %342 = vmatpush.msrb.mxu3 %v3523_v7 }
  0xa3   :  { %2976 = vmatmul.msk.f32.gmra.mxu3 %vm220_vm2, %v3546_v15 }
  0xab   :  { %2978 = vmatmul.msk.f32.vlgmr.msra.gmra.mxu3 %vm220_vm2, %v3546_v15 }
  0xac   :  { %388 = vmatpush.msra.mxu3 %v3529_v8 }
  0xff   :  { %v93_v17 = vpop.xlane.xlu0 %92 }
 0x100   :  { %v97_v18 = vsub.f32 %v3535_v11, %v93_v17 }
 0x102   :  { %v99_v19 = vmul.f32 1.442695, %v97_v18 }
 0x104   :  { %3378 = vpow2.f32 %v99_v19  ;;  %v2054_v19 = vld [vmem:[%s4817_s2 + $0x70] sm:$0xff] }
 0x107   :  { %v96_v20 = vpop.xlane.xlu0 %95 }
 0x108   :  { %v98_v21 = vsub.f32 %v3546_v15, %v96_v20  ;;  %v3424_v20 = vmov 0  }
 0x109   :  { %3133 = vset.pattern.permute.xlu1 %v3424_v20  ;;  %3132 = vset.pattern.permute.xlu0 %v3424_v20 }
 0x10a   :  { %v3561_v22 = vpop.eup %3378  ;;  %v101_v23 = vmul.f32 1.442695, %v98_v21  ;;  %3134 = vset.pattern.permute.xlu2 %v3424_v20 }
 0x10b   :  { %109 = vrot.lane.b32.xlu1 %v3561_v22, %s3413_s4 }
 0x10c   :  { %3380 = vpow2.f32 %v101_v23  ;;  %v2055_v23 = vld [vmem:[%s4817_s2 + $0x78] sm:$0xff] }
 0x112   :  { %v3565_v24 = vpop.eup %3380 }
 0x113   :  { %111 = vrot.lane.b32.xlu1 %v3565_v24, %s3413_s4 }
 0x17d   :  { %v110_v29 = vpop.permute.xlu1 %109 }
 0x17e   :  { %2965 = vmatmul.msk.f32.vlgmr.msra.gmra.mxu1 %vm113_vm4, %v110_v29  ;;  %v3795_v29 = vld [vmem:[%s4820_s5 + $0x10] sm:$0xff] }
 0x17f   :  { %411 = vmatpush.msra.mxu1 %v3540_v12 }
 0x185   :  { %v112_v30 = vpop.permute.xlu1 %111 }
 0x186   :  { %2966 = vmatmul.msk.f32.gmra.mxu1 %vm113_vm4, %v112_v30  ;;  %v3802_v30 = vld [vmem:[%s4820_s5 + $0x8] sm:$0xff] }
 0x18e   :  { %2977 = vmatmul.msk.f32.vlgmr.msrb.gmra.mxu1 %vm220_vm2, %v3535_v11 }
 0x18f   :  { %513 = vmatpush.msrb.mxu1 %v3540_v12 }
 0x1fb   :  { %v135_v33 = vpop.f32.mrf.mxu1 }
 0x1fc   :  { %3382 = vrcp.f32 %v135_v33  ;;  %v152_v38 = vand.u32 2147483648, %v135_v33  ;;  %v150_v40 = vand.u32 2147483647, %v135_v33  ;;  %vm146_vm6 = vweird.f32 %v135_v33 }
 0x1fe   :  { %v153_v43 = vor.u32 1.1754944e-38, %v152_v38  ;;  %vm151_vm9 = vcmp.eq.f32.partialorder %v150_v40, 8.507059e+37  ;;  %v2041_v40 = vld [vmem:[%s4817_s2 + $0x8] sm:$0xff] }
 0x202   :  { %v3383_v34 = vpop.eup %3382 }
 0x203   :  { %v142_v35 = vmul.f32 %v3383_v34, %v135_v33  ;;  %v138_v36 = vpop.f32.mrf.mxu1  ;;  %vm147_vm5 = vweird.f32 %v3383_v34  ;;  %v2043_v33 = vld [vmem:[%s4817_s2 + $0x18] sm:$0xff] }
 0x204   :  { %3384 = vrcp.f32 %v138_v36  ;;  %vm148_vm7 = vmor %vm146_vm6, %vm147_vm5  ;;  %v166_v48 = vand.u32 2147483648, %v138_v36  ;;  %v164_v50 = vand.u32 2147483647, %v138_v36  ;;  %vm160_vm11 = vweird.f32 %v138_v36 }
 0x205   :  { %v143_v37 = vsub.f32 1.0, %v142_v35  ;;  %v3819_v35 = vld [vmem:[%s4820_s5] sm:$0xff] }
 0x206   :  { %v167_v52 = vor.u32 1.1754944e-38, %v166_v48  ;;  %vm165_vm13 = vcmp.eq.f32.partialorder %v164_v50, 8.507059e+37  ;;  %v1792_v50 = vld [vmem:[%s4816_s1 + $0x8] sm:$0xff] }
 0x207   :  { %v144_v39 = vmul.f32 %v3383_v34, %v143_v37  ;;  %v2040_v37 = vld [vmem:[%s4817_s2] sm:$0xff] }
 0x209   :  { %v145_v41 = vadd.f32 %v3383_v34, %v144_v39  ;;  %v2053_v39 = vld [vmem:[%s4817_s2 + $0x68] sm:$0xff] }
 0x20a   :  { %v3385_v42 = vpop.eup %3384 }
 0x20b   :  { %v156_v44 = vmul.f32 %v3385_v42, %v138_v36  ;;  %v149_v45 = vsel %vm148_vm7, %v3383_v34, %v145_v41  ;;  %vm161_vm10 = vweird.f32 %v3385_v42  ;;  %v2044_v36 = vld [vmem:[%s4817_s2 + $0x20] sm:$0xff]  ;;  %v3854_v41 = vpop.f32.mrf.mxu3 }
 0x20c   :  { %v154_v46 = vsel %vm151_vm9, %v153_v43, %v149_v45  ;;  %vm162_vm12 = vmor %vm160_vm11, %vm161_vm10  ;;  %4839 = vst [vmem:[#allocation8_spill] sm:$0xff] %v3854_v41 }
 0x20d   :  { %v157_v47 = vsub.f32 1.0, %v156_v44  ;;  %2968 = vmatmul.msk.f32.vlgmr.msrb.gmra.mxu0 %vm170_vm8, %v154_v46  ;;  %v2051_v44 = vld [vmem:[%s4817_s2 + $0x58] sm:$0xff] }
 0x20e   :  { %650 = vmatpush.msrb.mxu0 %v3523_v7 }
 0x20f   :  { %v158_v49 = vmul.f32 %v3385_v42, %v157_v47  ;;  %v1791_v47 = vld [vmem:[%s4816_s1] sm:$0xff] }
 0x211   :  { %v159_v51 = vadd.f32 %v3385_v42, %v158_v49  ;;  %v2048_v49 = vld [vmem:[%s4817_s2 + $0x40] sm:$0xff] }
 0x213   :  { %v163_v53 = vsel %vm162_vm12, %v3385_v42, %v159_v51  ;;  %v3872_v45 = vpop.f32.mrf.mxu3 }
 0x214   :  { %v168_v54 = vsel %vm165_vm13, %v167_v52, %v163_v53  ;;  %4841 = vst [vmem:[#allocation10_spill] sm:$0xff] %v3872_v45  ;;  %v2045_v53 = vld [vmem:[%s4817_s2 + $0x28] sm:$0xff] }
 0x215   :  { %2969 = vmatmul.msk.f32.vlgmr.msra.gmra.mxu2 %vm170_vm8, %v168_v54  ;;  %v1793_v54 = vld [vmem:[%s4816_s1 + $0x10] sm:$0xff] }
 0x216   :  { %365 = vmatpush.msra.mxu2 %v3597_v32 }
 0x21b   :  { %v3897_v51 = vpop.f32.mrf.mxu3 }
 0x21d   :  { %2973 = vmatmul.msk.f32.vlgmr.msrb.gmra.mxu2 %vm220_vm2, %v3535_v11 }
 0x21e   :  { %467 = vmatpush.msrb.mxu2 %v3597_v32 }
 0x225   :  { %2974 = vmatmul.msk.f32.gmra.mxu2 %vm220_vm2, %v3546_v15 }
 0x28a   :  { %v197_v55 = vpop.f32.mrf.mxu0 }
 0x28b   :  { %205 = vrot.lane.b32.xlu2 %v197_v55, %s3413_s4  ;;  %v3918_v55 = vpop.f32.mrf.mxu3 }
 0x298   :  { %v200_v56 = vpop.f32.mrf.mxu2 }
 0x299   :  { %207 = vrot.lane.b32.xlu2 %v200_v56, %s3413_s4 }
 0x2a0   :  { %v3920_v56 = vpop.f32.mrf.mxu2 }
 0x2a1   :  { %627 = vrot.lane.b32.xlu2 %v3535_v11, %s3414_s9  ;;  %4845 = vst [vmem:[#allocation14_spill] sm:$0xff] %v3920_v56 }
 0x2a9   :  { %727 = vrot.lane.b32.xlu2 %v3535_v11, %s3415_s12 }
 0x2e5   :  { %v206_v57 = vpop.permute.xlu2 %205 }
 0x2e6   :  { %v211_v58 = vmul.f32 %v3561_v22, %v206_v57  ;;  %v2052_v22 = vld [vmem:[%s4817_s2 + $0x60] sm:$0xff] }
 0x2e8   :  { %421 = vrot.lane.b32.xlu0 %v211_v58, %s3413_s4  ;;  %827 = vrot.lane.b32.xlu2 %v211_v58, %s3416_s22 }
 0x2f0   :  { %1017 = vrot.lane.b32.xlu2 %v3546_v15, %s3417_s23 }
 0x2f3   :  { %v208_v59 = vpop.permute.xlu2 %207 }
 0x2f4   :  { %v212_v60 = vmul.f32 %v3565_v24, %v208_v59  ;;  %v2049_v24 = vld [vmem:[%s4817_s2 + $0x48] sm:$0xff]  ;;  %v3933_v59 = vpop.f32.mrf.mxu1 }
 0x2f6   :  { %829 = vrot.lane.b32.xlu0 %v212_v60, %s3416_s22  ;;  %423 = vrot.lane.b32.xlu1 %v212_v60, %s3413_s4  ;;  %s3426_s4 = smov 128  }
 0x2f8   :  { %1215 = vrot.lane.b32.xlu2 %v211_v58, %s3418_s3 }
 0x2fb   :  { %v3637_v62 = vpop.permute.xlu2 %627 }
 0x2fe   :  { %1115 = vrot.lane.b32.xlu0 %v3535_v11, %s3419_s24  ;;  %629 = vrot.lane.b32.xlu1 %v3546_v15, %s3414_s9 }
 0x300   :  { %1405 = vrot.lane.b32.xlu2 %v3546_v15, %s3420_s25 }
 0x303   :  { %v3643_v0 = vpop.permute.xlu2 %727 }
 0x306   :  { %1217 = vrot.lane.b32.xlu0 %v212_v60, %s3418_s3  ;;  %729 = vrot.lane.b32.xlu1 %v3546_v15, %s3415_s12 }
 0x308   :  { %1603 = vrot.lane.b32.xlu2 %v211_v58, %s3421_s26  ;;  %v2042_v58 = vld [vmem:[%s4817_s2 + $0x10] sm:$0xff] }
 0x30e   :  { %1503 = vrot.lane.b32.xlu0 %v3535_v11, %s3422_s0  ;;  %1015 = vrot.lane.b32.xlu1 %v3535_v11, %s3417_s23 }
 0x310   :  { %321 = vrot.lane.b32.xlu2 %v3546_v15, %s3423_s27 }
 0x316   :  { %1605 = vrot.lane.b32.xlu0 %v212_v60, %s3421_s26  ;;  %1117 = vrot.lane.b32.xlu1 %v3546_v15, %s3419_s24  ;;  %v1794_v60 = vld [vmem:[%s4816_s1 + $0x18] sm:$0xff] }
 0x318   :  { %2139 = vperm.xlu2 %3134, %v2053_v39  }
 0x31e   :  { %1403 = vrot.lane.b32.xlu1 %v3535_v11, %s3420_s25  ;;  %2149 = vperm.xlu0 %3132, %v2055_v23  }
 0x320   :  { %2129 = vperm.xlu2 %3134, %v2051_v44   ;;  %v1802_v44 = vld [vmem:[%s4816_s1 + $0x58] sm:$0xff] }
 0x326   :  { %1505 = vrot.lane.b32.xlu1 %v3546_v15, %s3422_s0 }
 0x328   :  { %2114 = vperm.xlu2 %3134, %v2048_v49  }
 0x32e   :  { %319 = vrot.lane.b32.xlu1 %v3535_v11, %s3423_s27  ;;  %s2950_s27 = sshll.u32 %s4828_s13, 4  ;;  %s2951_s27 = int_to_ptr.hbm [resolvable:$true] %s2950_s27 }
 0x330   :  { %2099 = vperm.xlu2 %3134, %v2045_v53   ;;  %v4098_v53 = vld [vmem:[%s4825_s10] ss:$2 sm:$0xf] }
 0x336   :  { %2144 = vperm.xlu1 %3133, %v2054_v19  }
 0x338   :  { %2084 = vperm.xlu2 %3134, %v2042_v58  }
 0x33e   :  { %2134 = vperm.xlu1 %3133, %v2052_v22  }
 0x342   :  { %v3650_v2 = vpop.permute.xlu2 %827 }
 0x346   :  { %2119 = vperm.xlu1 %3133, %v2049_v24  }
 0x34a   :  { %v3656_v4 = vpop.permute.xlu2 %1017 }
 0x34e   :  { %2104 = vperm.xlu1 %3133, %v2046_v25  }
 0x352   :  { %v3667_v9 = vpop.permute.xlu2 %1215 }
 0x356   :  { %2089 = vperm.xlu1 %3133, %v2043_v33  }
 0x35a   :  { %v422_v61 = vpop.permute.xlu0 %421  ;;  %v3674_v11 = vpop.permute.xlu2 %1405 }
 0x35b   :  { %2987 = vmatmul.msk.f32.vlgmr.msra.gmra.mxu0 %vm220_vm2, %v422_v61 }
 0x35c   :  { %750 = vmatpush.msra.mxu0 %v3523_v7 }
 0x35e   :  { %2074 = vperm.xlu1 %3133, %v2040_v37  }
 0x362   :  { %v3682_v15 = vpop.permute.xlu2 %1603 }
 0x368   :  { %v3639_v63 = vpop.permute.xlu1 %423  ;;  %v3676_v13 = vpop.permute.xlu0 %829 }
 0x369   :  { %2988 = vmatmul.msk.f32.gmra.mxu0 %vm220_vm2, %v3639_v63 }
 0x36a   :  { %v322_v17 = vpop.permute.xlu2 %321 }
 0x370   :  { %v3645_v1 = vpop.permute.xlu1 %629  ;;  %v3698_v18 = vpop.permute.xlu0 %1115 }
 0x371   :  { %2995 = vmatmul.msk.f32.vlgmr.msrb.gmra.mxu0 %vm220_vm2, %v3637_v62 }
 0x372   :  { %850 = vmatpush.msrb.mxu0 %v3523_v7  ;;  %v4140_v45 = vpop.permute.xlu2 %2139 }
 0x373   :  { %4866 = vst [vmem:[#allocation35_spill] sm:$0xff] %v4140_v45 }
 0x378   :  { %v3652_v3 = vpop.permute.xlu1 %729  ;;  %v3730_v21 = vpop.permute.xlu0 %1217 }
 0x379   :  { %2996 = vmatmul.msk.f32.gmra.mxu0 %vm220_vm2, %v3645_v1 }
 0x380   :  { %v3658_v5 = vpop.permute.xlu1 %1015  ;;  %v3782_v28 = vpop.permute.xlu0 %1503 }
 0x381   :  { %3003 = vmatmul.msk.f32.vlgmr.msra.gmra.mxu0 %vm220_vm2, %v3643_v0 }
 0x382   :  { %1038 = vmatpush.msra.mxu0 %v3523_v7 }
 0x388   :  { %v3663_v6 = vpop.permute.xlu1 %1117  ;;  %v3859_v43 = vpop.permute.xlu0 %1605 }
 0x389   :  { %3004 = vmatmul.msk.f32.gmra.mxu0 %vm220_vm2, %v3652_v3 }
 0x390   :  { %v3669_v10 = vpop.permute.xlu1 %1403 }
 0x391   :  { %3011 = vmatmul.msk.f32.vlgmr.msrb.gmra.mxu0 %vm220_vm2, %v3650_v2 }
 0x392   :  { %1138 = vmatpush.msrb.mxu0 %v3523_v7 }
 0x398   :  { %v3678_v14 = vpop.permute.xlu1 %1505 }
 0x399   :  { %3012 = vmatmul.msk.f32.gmra.mxu0 %vm220_vm2, %v3676_v13 }
 0x3a0   :  { %v320_v16 = vpop.permute.xlu1 %319 }
 0x3a1   :  { %2979 = vmatmul.msk.f32.vlgmr.msrb.gmra.mxu3 %vm220_vm2, %v320_v16  ;;  %2981 = vmatmul.msk.f32.vlgmr.msra.gmra.mxu2 %vm220_vm2, %v320_v16 }
 0x3a2   :  { %2985 = vmatmul.msk.f32.vlgmr.msra.gmra.mxu1 %vm220_vm2, %v320_v16  ;;  %3019 = vmatmul.msk.f32.vlgmr.msra.gmra.mxu0 %vm220_vm2, %v3658_v5 }
 0x3a3   :  { %1238 = vmatpush.msra.mxu0 %v3523_v7  ;;  %490 = vmatpush.msrb.mxu3 %v3529_v8 }
 0x3a4   :  { %673 = vmatpush.msra.mxu2 %v3597_v32  ;;  %719 = vmatpush.msra.mxu1 %v3540_v12 }
 0x3a9   :  { %2980 = vmatmul.msk.f32.gmra.mxu3 %vm220_vm2, %v322_v17  ;;  %2982 = vmatmul.msk.f32.gmra.mxu2 %vm220_vm2, %v322_v17 }
 0x3aa   :  { %2986 = vmatmul.msk.f32.gmra.mxu1 %vm220_vm2, %v322_v17  ;;  %3020 = vmatmul.msk.f32.gmra.mxu0 %vm220_vm2, %v3656_v4 }
 0x3b1   :  { %2983 = vmatmul.msk.f32.vlgmr.msra.gmra.mxu3 %vm220_vm2, %v320_v16  ;;  %2989 = vmatmul.msk.f32.vlgmr.msrb.gmra.mxu2 %vm220_vm2, %v422_v61  ;;  %v1797_v16 = vld [vmem:[%s4816_s1 + $0x30] sm:$0xff] }
 0x3b2   :  { %2993 = vmatmul.msk.f32.vlgmr.msrb.gmra.mxu1 %vm220_vm2, %v422_v61  ;;  %3027 = vmatmul.msk.f32.vlgmr.msrb.gmra.mxu0 %vm220_vm2, %v3698_v18 }
 0x3b3   :  { %1426 = vmatpush.msrb.mxu0 %v3523_v7  ;;  %696 = vmatpush.msra.mxu3 %v3529_v8 }
 0x3b4   :  { %773 = vmatpush.msrb.mxu2 %v3597_v32  ;;  %819 = vmatpush.msrb.mxu1 %v3540_v12 }
 0x3b9   :  { %2984 = vmatmul.msk.f32.gmra.mxu3 %vm220_vm2, %v322_v17  ;;  %2990 = vmatmul.msk.f32.gmra.mxu2 %vm220_vm2, %v3639_v63 }
 0x3ba   :  { %2994 = vmatmul.msk.f32.gmra.mxu1 %vm220_vm2, %v3639_v63  ;;  %3028 = vmatmul.msk.f32.gmra.mxu0 %vm220_vm2, %v3663_v6 }
 0x3c1   :  { %2991 = vmatmul.msk.f32.vlgmr.msrb.gmra.mxu3 %vm220_vm2, %v422_v61  ;;  %2997 = vmatmul.msk.f32.vlgmr.msra.gmra.mxu2 %vm220_vm2, %v3637_v62  ;;  %v3945_v61 = vpop.f32.mrf.mxu3 }
 0x3c2   :  { %3001 = vmatmul.msk.f32.vlgmr.msra.gmra.mxu1 %vm220_vm2, %v3637_v62  ;;  %3035 = vmatmul.msk.f32.vlgmr.msra.gmra.mxu0 %vm220_vm2, %v3667_v9 }
 0x3c3   :  { %1526 = vmatpush.msra.mxu0 %v3523_v7  ;;  %796 = vmatpush.msrb.mxu3 %v3529_v8 }
 0x3c4   :  { %873 = vmatpush.msra.mxu2 %v3597_v32  ;;  %919 = vmatpush.msra.mxu1 %v3540_v12 }
 0x3c9   :  { %2992 = vmatmul.msk.f32.gmra.mxu3 %vm220_vm2, %v3639_v63  ;;  %2998 = vmatmul.msk.f32.gmra.mxu2 %vm220_vm2, %v3645_v1 }
 0x3ca   :  { %3002 = vmatmul.msk.f32.gmra.mxu1 %vm220_vm2, %v3645_v1  ;;  %3036 = vmatmul.msk.f32.gmra.mxu0 %vm220_vm2, %v3730_v21 }
 0x3d1   :  { %2999 = vmatmul.msk.f32.vlgmr.msra.gmra.mxu3 %vm220_vm2, %v3637_v62  ;;  %3005 = vmatmul.msk.f32.vlgmr.msrb.gmra.mxu2 %vm220_vm2, %v3643_v0  ;;  %v3947_v62 = vpop.f32.mrf.mxu2 }
 0x3d2   :  { %3009 = vmatmul.msk.f32.vlgmr.msrb.gmra.mxu1 %vm220_vm2, %v3643_v0  ;;  %3043 = vmatmul.msk.f32.vlgmr.msrb.gmra.mxu0 %vm220_vm2, %v3669_v10 }
 0x3d3   :  { %1626 = vmatpush.msrb.mxu0 %v3523_v7  ;;  %896 = vmatpush.msra.mxu3 %v3529_v8  ;;  %v2050_v7 = vld [vmem:[%s4817_s2 + $0x50] sm:$0xff] }
 0x3d4   :  { %1061 = vmatpush.msrb.mxu2 %v3597_v32  ;;  %1107 = vmatpush.msrb.mxu1 %v3540_v12 }
 0x3d5   :  { %2124 = vperm.xlu0 %3132, %v2050_v7  }
 0x3d8   :  { %v3775_v26 = vpop.f32.mrf.mxu0 }
 0x3d9   :  { %3000 = vmatmul.msk.f32.gmra.mxu3 %vm220_vm2, %v3645_v1  ;;  %3006 = vmatmul.msk.f32.gmra.mxu2 %vm220_vm2, %v3652_v3  ;;  %4836 = vst [vmem:[#allocation5_spill] sm:$0xff] %v3775_v26  ;;  %v1795_v1 = vld [vmem:[%s4816_s1 + $0x20] sm:$0xff] }
 0x3da   :  { %3010 = vmatmul.msk.f32.gmra.mxu1 %vm220_vm2, %v3652_v3  ;;  %3044 = vmatmul.msk.f32.gmra.mxu0 %vm220_vm2, %v3674_v11 }
 0x3dd   :  { %2109 = vperm.xlu0 %3132, %v2047_v31  }
 0x3e1   :  { %3007 = vmatmul.msk.f32.vlgmr.msrb.gmra.mxu3 %vm220_vm2, %v3643_v0  ;;  %3013 = vmatmul.msk.f32.vlgmr.msra.gmra.mxu2 %vm220_vm2, %v3650_v2 }
 0x3e2   :  { %3017 = vmatmul.msk.f32.vlgmr.msra.gmra.mxu1 %vm220_vm2, %v3650_v2  ;;  %3051 = vmatmul.msk.f32.vlgmr.msra.gmra.mxu0 %vm220_vm2, %v3782_v28 }
 0x3e3   :  { %1939 = vmatpush.msra.mxu0 %v3780_v27  ;;  %1084 = vmatpush.msrb.mxu3 %v3529_v8 }
 0x3e4   :  { %1161 = vmatpush.msra.mxu2 %v3597_v32  ;;  %1207 = vmatpush.msra.mxu1 %v3540_v12 }
 0x3e5   :  { %1940 = vmatpush.msra.mxu0 %v3795_v29  ;;  %2094 = vperm.xlu0 %3132, %v2044_v36  }
 0x3e6   :  { %v3813_v34 = vpop.f32.mrf.mxu0 }
 0x3e7   :  { %4837 = vst [vmem:[#allocation6_spill] sm:$0xff] %v3813_v34  ;;  %1941 = vmatpush.msra.mxu0 %v3802_v30 }
 0x3e9   :  { %3008 = vmatmul.msk.f32.gmra.mxu3 %vm220_vm2, %v3652_v3  ;;  %3014 = vmatmul.msk.f32.gmra.mxu2 %vm220_vm2, %v3676_v13 }
 0x3ea   :  { %3018 = vmatmul.msk.f32.gmra.mxu1 %vm220_vm2, %v3676_v13  ;;  %3052 = vmatmul.msk.f32.gmra.mxu0 %vm220_vm2, %v3678_v14 }
 0x3eb   :  { %1942 = vmatpush.msra.mxu0 %v3819_v35 }
 0x3ed   :  { %2079 = vperm.xlu0 %3132, %v2041_v40  }
 0x3ee   :  { %v3836_v38 = vpop.f32.mrf.mxu0 }
 0x3ef   :  { %4838 = vst [vmem:[#allocation7_spill] sm:$0xff] %v3836_v38 }
 0x3f1   :  { %3015 = vmatmul.msk.f32.vlgmr.msra.gmra.mxu3 %vm220_vm2, %v3650_v2  ;;  %3021 = vmatmul.msk.f32.vlgmr.msrb.gmra.mxu2 %vm220_vm2, %v3658_v5 }
 0x3f2   :  { %3025 = vmatmul.msk.f32.vlgmr.msrb.gmra.mxu1 %vm220_vm2, %v3658_v5  ;;  %3059 = vmatmul.msk.f32.vlgmr.msrb.gmra.mxu0 %vm220_vm2, %v3682_v15 }
 0x3f3   :  { %1184 = vmatpush.msra.mxu3 %v3529_v8  ;;  %1261 = vmatpush.msrb.mxu2 %v3597_v32 }
 0x3f4   :  { %1307 = vmatpush.msrb.mxu1 %v3540_v12 }
 0x3f6   :  { %v3857_v42 = vpop.f32.mrf.mxu0 }
 0x3f7   :  { %4840 = vst [vmem:[#allocation9_spill] sm:$0xff] %v3857_v42 }
 0x3f9   :  { %3016 = vmatmul.msk.f32.gmra.mxu3 %vm220_vm2, %v3676_v13  ;;  %3022 = vmatmul.msk.f32.gmra.mxu2 %vm220_vm2, %v3656_v4 }
 0x3fa   :  { %3026 = vmatmul.msk.f32.gmra.mxu1 %vm220_vm2, %v3656_v4  ;;  %3060 = vmatmul.msk.f32.gmra.mxu0 %vm220_vm2, %v3859_v43 }
 0x3fe   :  { %v3874_v46 = vpop.f32.mrf.mxu0 }
 0x3ff   :  { %4842 = vst [vmem:[#allocation11_spill] sm:$0xff] %v3874_v46 }
 0x401   :  { %3023 = vmatmul.msk.f32.vlgmr.msrb.gmra.mxu3 %vm220_vm2, %v3658_v5  ;;  %3029 = vmatmul.msk.f32.vlgmr.msra.gmra.mxu2 %vm220_vm2, %v3698_v18 }
 0x402   :  { %3033 = vmatmul.msk.f32.vlgmr.msra.gmra.mxu1 %vm220_vm2, %v3698_v18  ;;  %3067 = vmatmul.msk.f32.vlgmr.msra.gmra.mxu0 %vm113_vm4, %v1791_v47  ;;  %v4091_v47 = vpop.permute.xlu0 %2149 }
 0x403   :  { %1284 = vmatpush.msrb.mxu3 %v3529_v8  ;;  %1449 = vmatpush.msra.mxu2 %v3597_v32  ;;  %4861 = vst [vmem:[#allocation30_spill] sm:$0xff] %v4091_v47 }
 0x404   :  { %1495 = vmatpush.msra.mxu1 %v3540_v12 }
 0x406   :  { %v3889_v48 = vpop.f32.mrf.mxu0 }
 0x407   :  { %4843 = vst [vmem:[#allocation12_spill] sm:$0xff] %v3889_v48 }
 0x409   :  { %3024 = vmatmul.msk.f32.gmra.mxu3 %vm220_vm2, %v3656_v4  ;;  %3030 = vmatmul.msk.f32.gmra.mxu2 %vm220_vm2, %v3663_v6 }
 0x40a   :  { %3034 = vmatmul.msk.f32.gmra.mxu1 %vm220_vm2, %v3663_v6  ;;  %3068 = vmatmul.msk.f32.gmra.mxu0 %vm113_vm4, %v1792_v50 }
 0x40e   :  { %v3906_v52 = vpop.f32.mrf.mxu0 }
 0x40f   :  { %4844 = vst [vmem:[#allocation13_spill] sm:$0xff] %v3906_v52 }
 0x411   :  { %3031 = vmatmul.msk.f32.vlgmr.msra.gmra.mxu3 %vm220_vm2, %v3698_v18  ;;  %3037 = vmatmul.msk.f32.vlgmr.msrb.gmra.mxu2 %vm220_vm2, %v3667_v9 }
 0x412   :  { %3041 = vmatmul.msk.f32.vlgmr.msrb.gmra.mxu1 %vm220_vm2, %v3667_v9  ;;  %3069 = vmatmul.msk.f32.gmra.mxu0 %vm113_vm4, %v1793_v54  ;;  %v4103_v54 = vld [vmem:[%s4825_s10 + $0x1] ss:$2 sm:$0xf] }
 0x413   :  { %1472 = vmatpush.msra.mxu3 %v3529_v8  ;;  %1549 = vmatpush.msrb.mxu2 %v3597_v32  ;;  %v4129_v34 = vperm.slane %v4103_v54, 2 }
 0x414   :  { %1595 = vmatpush.msrb.mxu1 %v3540_v12 }
 0x416   :  { %v3928_v57 = vpop.f32.mrf.mxu0 }
 0x417   :  { %4846 = vst [vmem:[#allocation15_spill] sm:$0xff] %v3928_v57 }
 0x419   :  { %3032 = vmatmul.msk.f32.gmra.mxu3 %vm220_vm2, %v3663_v6  ;;  %3038 = vmatmul.msk.f32.gmra.mxu2 %vm220_vm2, %v3730_v21  ;;  %v1796_v6 = vld [vmem:[%s4816_s1 + $0x28] sm:$0xff] }
 0x41a   :  { %3042 = vmatmul.msk.f32.gmra.mxu1 %vm220_vm2, %v3730_v21  ;;  %3070 = vmatmul.msk.f32.gmra.mxu0 %vm113_vm4, %v1794_v60  ;;  %v1803_v60 = vld [vmem:[%s4816_s1 + $0x60] sm:$0xff] }
 0x41f   :  { %v3949_v63 = vpop.f32.mrf.mxu1  ;;  %v3951_v0 = vpop.f32.mrf.mxu0 }
 0x420   :  { %4847 = vst [vmem:[#allocation16_spill] sm:$0xff] %v3951_v0 }
 0x421   :  { %3039 = vmatmul.msk.f32.vlgmr.msrb.gmra.mxu3 %vm220_vm2, %v3667_v9  ;;  %3045 = vmatmul.msk.f32.vlgmr.msra.gmra.mxu2 %vm220_vm2, %v3669_v10 }
 0x422   :  { %3049 = vmatmul.msk.f32.vlgmr.msra.gmra.mxu1 %vm220_vm2, %v3669_v10  ;;  %3071 = vmatmul.msk.f32.gmra.mxu0 %vm113_vm4, %v1795_v1  ;;  %v4111_v1 = vperm.slane %v4098_v53, 0 }
 0x423   :  { %1572 = vmatpush.msrb.mxu3 %v3529_v8  ;;  %1649 = vmatpush.msra.mxu2 %v3597_v32 }
 0x424   :  { %v3965_v2 = vpop.f32.mrf.mxu3  ;;  %v3967_v3 = vpop.f32.mrf.mxu2  ;;  %1695 = vmatpush.msra.mxu1 %v3540_v12  ;;  %4862 = vst [vmem:[#allocation31_spill] sm:$0xff] %v4111_v1 }
 0x425   :  { %4848 = vst [vmem:[#allocation17_spill] sm:$0xff] %v3965_v2 }
 0x426   :  { %4849 = vst [vmem:[#allocation18_spill] sm:$0xff] %v3967_v3 }
 0x427   :  { %v3970_v4 = vpop.f32.mrf.mxu1  ;;  %v3972_v5 = vpop.f32.mrf.mxu0 }
 0x428   :  { %4850 = vst [vmem:[#allocation19_spill] sm:$0xff] %v3972_v5 }
 0x429   :  { %3040 = vmatmul.msk.f32.gmra.mxu3 %vm220_vm2, %v3730_v21  ;;  %3046 = vmatmul.msk.f32.gmra.mxu2 %vm220_vm2, %v3674_v11 }
 0x42a   :  { %3050 = vmatmul.msk.f32.gmra.mxu1 %vm220_vm2, %v3674_v11  ;;  %3072 = vmatmul.msk.f32.gmra.mxu0 %vm113_vm4, %v1796_v6  ;;  %v4114_v6 = vperm.slane %v4103_v54, 0 }
 0x42c   :  { %v3984_v12 = vpop.f32.mrf.mxu3  ;;  %v3986_v32 = vpop.f32.mrf.mxu2  ;;  %4863 = vst [vmem:[#allocation32_spill] sm:$0xff] %v4114_v6 }
 0x42d   :  { %4851 = vst [vmem:[#allocation20_spill] sm:$0xff] %v3984_v12 }
 0x42f   :  { %v3988_v9 = vpop.f32.mrf.mxu1  ;;  %v3990_v13 = vpop.f32.mrf.mxu0 }
 0x430   :  { %4852 = vst [vmem:[#allocation21_spill] sm:$0xff] %v3990_v13 }
 0x431   :  { %3047 = vmatmul.msk.f32.vlgmr.msra.gmra.mxu3 %vm220_vm2, %v3669_v10  ;;  %3053 = vmatmul.msk.f32.vlgmr.msrb.gmra.mxu2 %vm220_vm2, %v3782_v28 }
 0x432   :  { %3057 = vmatmul.msk.f32.vlgmr.msrb.gmra.mxu1 %vm220_vm2, %v3782_v28  ;;  %3073 = vmatmul.msk.f32.gmra.mxu0 %vm113_vm4, %v1797_v16 }
 0x433   :  { %1672 = vmatpush.msra.mxu3 %v3529_v8  ;;  %3110 = vmatpush.msrb.mxu2 %v3780_v27  ;;  %v1798_v8 = vld [vmem:[%s4816_s1 + $0x38] sm:$0xff] }
 0x434   :  { %v4004_v17 = vpop.f32.mrf.mxu3  ;;  %v4006_v18 = vpop.f32.mrf.mxu2  ;;  %3109 = vmatpush.msrb.mxu1 %v3780_v27 }
 0x435   :  { %4853 = vst [vmem:[#allocation22_spill] sm:$0xff] %v4006_v18  ;;  %3112 = vmatpush.msrb.mxu2 %v3795_v29 }
 0x436   :  { %3111 = vmatpush.msrb.mxu1 %v3795_v29 }
 0x437   :  { %v4011_v10 = vpop.f32.mrf.mxu1  ;;  %v4013_v19 = vpop.f32.mrf.mxu0  ;;  %3114 = vmatpush.msrb.mxu2 %v3802_v30 }
 0x438   :  { %4854 = vst [vmem:[#allocation23_spill] sm:$0xff] %v4013_v19  ;;  %3113 = vmatpush.msrb.mxu1 %v3802_v30 }
 0x439   :  { %3048 = vmatmul.msk.f32.gmra.mxu3 %vm220_vm2, %v3674_v11  ;;  %3054 = vmatmul.msk.f32.gmra.mxu2 %vm220_vm2, %v3678_v14  ;;  %v1799_v11 = vld [vmem:[%s4816_s1 + $0x40] sm:$0xff] }
 0x43a   :  { %3058 = vmatmul.msk.f32.gmra.mxu1 %vm220_vm2, %v3678_v14  ;;  %3074 = vmatmul.msk.f32.gmra.mxu0 %vm113_vm4, %v1798_v8 }
 0x43b   :  { %3116 = vmatpush.msrb.mxu2 %v3819_v35  ;;  %3115 = vmatpush.msrb.mxu1 %v3819_v35  ;;  %v1801_v35 = vld [vmem:[%s4816_s1 + $0x50] sm:$0xff] }
 0x43c   :  { %v4029_v20 = vpop.f32.mrf.mxu3  ;;  %v4031_v21 = vpop.f32.mrf.mxu2 }
 0x43f   :  { %v4033_v22 = vpop.f32.mrf.mxu1  ;;  %v4035_v23 = vpop.f32.mrf.mxu0 }
 0x440   :  { %4855 = vst [vmem:[#allocation24_spill] sm:$0xff] %v4035_v23 }
 0x441   :  { %3055 = vmatmul.msk.f32.vlgmr.msrb.gmra.mxu3 %vm220_vm2, %v3782_v28  ;;  %3061 = vmatmul.msk.f32.vlgmr.msra.gmra.mxu2 %vm220_vm2, %v3682_v15  ;;  %v1800_v28 = vld [vmem:[%s4816_s1 + $0x48] sm:$0xff] }
 0x442   :  { %3065 = vmatmul.msk.f32.vlgmr.msra.gmra.mxu1 %vm220_vm2, %v3682_v15  ;;  %3075 = vmatmul.msk.f32.gmra.mxu0 %vm113_vm4, %v1799_v11 }
 0x444   :  { %v4047_v24 = vpop.f32.mrf.mxu3  ;;  %v4049_v7 = vpop.f32.mrf.mxu2 }
 0x445   :  { %4856 = vst [vmem:[#allocation25_spill] sm:$0xff] %v4049_v7 }
 0x447   :  { %v4051_v25 = vpop.f32.mrf.mxu1  ;;  %v4053_v27 = vpop.f32.mrf.mxu0 }
 0x448   :  { %4857 = vst [vmem:[#allocation26_spill] sm:$0xff] %v4053_v27  ;;  %v4126_v57 = vpop.permute.xlu0 %2124 }
 0x449   :  { %3056 = vmatmul.msk.f32.gmra.mxu3 %vm220_vm2, %v3678_v14  ;;  %3062 = vmatmul.msk.f32.gmra.mxu2 %vm220_vm2, %v3859_v43  ;;  %v4076_v14 = vpop.permute.xlu1 %2144 }
 0x44a   :  { %3066 = vmatmul.msk.f32.gmra.mxu1 %vm220_vm2, %v3859_v43  ;;  %3076 = vmatmul.msk.f32.gmra.mxu0 %vm113_vm4, %v1800_v28  ;;  %4858 = vst [vmem:[#allocation27_spill] sm:$0xff] %v4076_v14 }
 0x44c   :  { %v4065_v29 = vpop.f32.mrf.mxu3  ;;  %v4067_v30 = vpop.f32.mrf.mxu2 }
 0x44f   :  { %v4069_v31 = vpop.f32.mrf.mxu1  ;;  %v1428_v33 = vpop.f32.mrf.mxu0 }
 0x450   :  { %v1703_v16 = vsub.f32 %v1428_v33, %v4111_v1 }
 0x451   :  { %3063 = vmatmul.msk.f32.vlgmr.msra.gmra.mxu3 %vm220_vm2, %v3682_v15  ;;  %v4089_v15 = vpop.permute.xlu1 %2134 }
 0x452   :  { %3077 = vmatmul.msk.f32.gmra.mxu0 %vm113_vm4, %v1801_v35  ;;  %4860 = vst [vmem:[#allocation29_spill] sm:$0xff] %v4089_v15  ;;  %v4122_v35 = vperm.slane %v4098_v53, 2 }
 0x454   :  { %v698_v36 = vpop.f32.mrf.mxu3  ;;  %v4079_v37 = vpop.f32.mrf.mxu2 }
 0x455   :  { %4859 = vst [vmem:[#allocation28_spill] sm:$0xff] %v4079_v37  ;;  %v929_v33 = vsub.f32 %v698_v36, %v4122_v35 }
 0x457   :  { %v4081_v39 = vpop.f32.mrf.mxu1  ;;  %v1431_v40 = vpop.f32.mrf.mxu0  ;;  %v937_v42 = vand.u32 2147483647, %v929_v33 }
 0x458   :  { %v1707_v5 = vsub.f32 %v1431_v40, %v4111_v1  ;;  %v1805_v40 = vld [vmem:[%s4816_s1 + $0x70] sm:$0xff] }
 0x459   :  { %3064 = vmatmul.msk.f32.gmra.mxu3 %vm220_vm2, %v3859_v43  ;;  %v4124_v27 = vpop.permute.xlu1 %2119 }
 0x45a   :  { %3078 = vmatmul.msk.f32.gmra.mxu0 %vm113_vm4, %v1802_v44  ;;  %v1711_v44 = vand.u32 2147483647, %v1703_v16  ;;  %4865 = vst [vmem:[#allocation34_spill] sm:$0xff] %v4124_v27  ;;  %v1715_v56 = vand.u32 2147483647, %v1707_v5 }
 0x45c   :  { %v701_v49 = vpop.f32.mrf.mxu3  ;;  %v4093_v50 = vpop.f32.mrf.mxu2  ;;  %v1719_v16 = vsub.f32 1.0, %v1711_v44  ;;  %v1723_v5 = vsub.f32 1.0, %v1715_v56 }
 0x45e   :  { %v1727_v7 = vmax.f32 %v1719_v16, 0.0 }
 0x45f   :  { %v4105_v43 = vpop.f32.mrf.mxu1  ;;  %v1528_v58 = vpop.f32.mrf.mxu0 }
 0x460   :  { %v1735_v8 = vsub.f32 %v1528_v58, %v4114_v6  ;;  %v1804_v58 = vld [vmem:[%s4816_s1 + $0x68] sm:$0xff] }
 0x461   :  { %v4150_v26 = vpop.permute.xlu1 %2104 }
 0x462   :  { %3079 = vmatmul.msk.f32.gmra.mxu0 %vm113_vm4, %v1803_v60  ;;  %v1743_v48 = vand.u32 2147483647, %v1735_v8  ;;  %v945_v8 = vsub.f32 1.0, %v937_v42  ;;  %4867 = vst [vmem:[#allocation36_spill] sm:$0xff] %v4150_v26 }
 0x464   :  { %v798_v11 = vpop.f32.mrf.mxu3  ;;  %v4119_v28 = vpop.f32.mrf.mxu2  ;;  %v1751_v18 = vsub.f32 1.0, %v1743_v48 }
 0x465   :  { %4864 = vst [vmem:[#allocation33_spill] sm:$0xff] %v4119_v28  ;;  %v961_v12 = vsub.f32 %v798_v11, %v4129_v34  ;;  %v933_v11 = vsub.f32 %v701_v49, %v4122_v35  ;;  %v953_v49 = vmax.f32 %v945_v8, 0.0 }
 0x466   :  { %v1759_v33 = vmax.f32 %v1751_v18, 0.0 }
 0x467   :  { %v4132_v19 = vpop.f32.mrf.mxu1  ;;  %v1531_v60 = vpop.f32.mrf.mxu0  ;;  %v969_v37 = vand.u32 2147483647, %v961_v12  ;;  %v941_v16 = vand.u32 2147483647, %v933_v11 }
 0x468   :  { %v1739_v36 = vsub.f32 %v1531_v60, %v4114_v6  ;;  %v4152_v12 = vpop.permute.xlu0 %2109 }
 0x469   :  { %v977_v52 = vsub.f32 1.0, %v969_v37  ;;  %4868 = vst [vmem:[#allocation37_spill] sm:$0xff] %v4152_v12  ;;  %v4157_v37 = vpop.permute.xlu2 %2129 }
 0x46a   :  { %3080 = vmatmul.msk.f32.gmra.mxu0 %vm113_vm4, %v1804_v58  ;;  %v1747_v58 = vand.u32 2147483647, %v1739_v36 }
 0x46b   :  { %v985_v18 = vmax.f32 %v977_v52, 0.0  ;;  %v4167_v52 = vpop.permute.xlu1 %2089 }
 0x46c   :  { %v801_v28 = vpop.f32.mrf.mxu3  ;;  %v4143_v3 = vpop.f32.mrf.mxu2  ;;  %v1755_v13 = vsub.f32 1.0, %v1747_v58 }
 0x46d   :  { %v965_v60 = vsub.f32 %v801_v28, %v4129_v34  ;;  %v949_v28 = vsub.f32 1.0, %v941_v16 }
 0x46e   :  { %v1763_v8 = vmax.f32 %v1755_v13, 0.0 }
 0x46f   :  { %v1109_v44 = vpop.f32.mrf.mxu1  ;;  %v1628_v23 = vpop.f32.mrf.mxu0  ;;  %v973_v36 = vand.u32 2147483647, %v965_v60 }
 0x470   :  { %v1767_v48 = vmul.f32 %v1727_v7, %v1628_v23  ;;  %v1731_v7 = vmax.f32 %v1723_v5, 0.0 }
 0x472   :  { %v4154_v42 = vmul.f32 %v1767_v48, %v1759_v33  ;;  %3081 = vmatmul.msk.f32.gmra.mxu0 %vm113_vm4, %v1805_v40  ;;  %v1806_v40 = vld [vmem:[%s4816_s1 + $0x78] sm:$0xff]  ;;  %v981_v33 = vsub.f32 1.0, %v973_v36  ;;  %v4169_v48 = vpop.permute.xlu0 %2094  ;;  %v4176_v36 = vperm.slane %v4098_v53, 3 }
 0x473   :  { %4871 = vst [vmem:[#allocation40_spill] sm:$0xff] %v4169_v48 }
 0x474   :  { %4869 = vst [vmem:[#allocation38_spill] sm:$0xff] %v4154_v42  ;;  %v898_v46 = vpop.f32.mrf.mxu3  ;;  %v1063_v2 = vpop.f32.mrf.mxu2 }
 0x475   :  { %v993_v23 = vmul.f32 %v953_v49, %v898_v46  ;;  %v957_v46 = vmax.f32 %v949_v28, 0.0  ;;  %v989_v49 = vmax.f32 %v981_v33, 0.0  ;;  %v4181_v28 = vpop.permute.xlu2 %2114  ;;  %v2075_v42 = vpop.permute.xlu1 %2074 }
 0x476   :  { %4872 = vst [vmem:[#allocation41_spill] sm:$0xff] %v4181_v28 }
 0x477   :  { %v4159_v6 = vmul.f32 %v993_v23, %v985_v18  ;;  %v1112_v27 = vpop.f32.mrf.mxu1  ;;  %v1631_v56 = vpop.f32.mrf.mxu0 }
 0x478   :  { %v1771_v11 = vmul.f32 %v1731_v7, %v1631_v56  ;;  %v4179_v7 = vperm.slane %v4103_v54, 3  ;;  %v1318_v56 = vsub.f32 %v1109_v44, %v4176_v36  ;;  %v4200_v44 = vperm.slane %v4103_v54, 1 }
 0x479   :  { %v1322_v47 = vsub.f32 %v1112_v27, %v4176_v36 }
 0x47a   :  { %v4164_v58 = vmul.f32 %v1771_v11, %v1763_v8  ;;  %3082 = vmatmul.msk.f32.gmra.mxu0 %vm113_vm4, %v1806_v40  ;;  %v4187_v40 = vld [vmem:[%s4821_s6] ss:$0 sm:$0xff]  ;;  %v934_v8 = vsub.f32 %v4051_v25, %v4176_v36  ;;  %v2080_v28 = vpop.permute.xlu0 %2079  ;;  %v578_v54 = vsub.f32 %v3970_v4, %v4179_v7 }
 0x47c   :  { %4870 = vst [vmem:[#allocation39_spill] sm:$0xff] %v4164_v58  ;;  %v901_v60 = vpop.f32.mrf.mxu3  ;;  %v4171_v5 = vpop.f32.mrf.mxu2  ;;  %v942_v25 = vand.u32 2147483647, %v934_v8 }
 0x47d   :  { %v997_v16 = vmul.f32 %v957_v46, %v901_v60  ;;  %v537_v60 = vsub.f32 %v3945_v61, %v4176_v36  ;;  %v4215_v12 = vpop.permute.xlu2 %2099 }
 0x47e   :  { %4875 = vst [vmem:[#allocation44_spill] sm:$0xff] %v4215_v12 }
 0x47f   :  { %v4173_v18 = vmul.f32 %v997_v16, %v989_v49  ;;  %v1209_v23 = vpop.f32.mrf.mxu1  ;;  %v1944_v13 = vpop.f32.mrf.mxu0  ;;  %v4197_v49 = vperm.slane %v4098_v53, 1  ;;  %v1326_v16 = vand.u32 2147483647, %v1318_v56  ;;  %v545_v1 = vand.u32 2147483647, %v537_v60 }
 0x480   :  { %v1350_v11 = vsub.f32 %v1209_v23, %v4179_v7  ;;  %v1945_v58 = vadd.f32 %v4187_v40, %v1944_v13  ;;  %v966_v23 = vsub.f32 %v4081_v39, %v4179_v7  ;;  %v950_v39 = vsub.f32 1.0, %v942_v25 }
 0x481   :  { %v1316_v0 = vsub.f32 %v1063_v2, %v4197_v49  ;;  %v1334_v13 = vsub.f32 1.0, %v1326_v16  ;;  %v553_v27 = vsub.f32 1.0, %v545_v1  ;;  %v1330_v16 = vand.u32 2147483647, %v1322_v47 }
 0x482   :  { %v1358_v38 = vand.u32 2147483647, %v1350_v11  ;;  %v4211_v8 = vmul.f32 %v2075_v42, %v1945_v58  ;;  %v974_v2 = vand.u32 2147483647, %v966_v23  ;;  %v586_v58 = vand.u32 2147483647, %v578_v54 }
 0x483   :  { %v1324_v11 = vand.u32 2147483647, %v1316_v0  ;;  %v532_v0 = vsub.f32 %v3897_v51, %v4122_v35 }
 0x484   :  { %v4192_v33 = vpop.f32.mrf.mxu3  ;;  %v1163_v46 = vpop.f32.mrf.mxu2  ;;  %4873 = vst [vmem:[#allocation42_spill] sm:$0xff] %v4211_v8  ;;  %v1366_v26 = vsub.f32 1.0, %v1358_v38  ;;  %v958_v38 = vmax.f32 %v950_v39, 0.0  ;;  %v982_v45 = vsub.f32 1.0, %v974_v2 }
 0x485   :  { %v1348_v56 = vsub.f32 %v1163_v46, %v4200_v44  ;;  %v1332_v25 = vsub.f32 1.0, %v1324_v11  ;;  %v540_v39 = vand.u32 2147483647, %v532_v0 }
 0x486   :  { %v1374_v15 = vmax.f32 %v1366_v26, 0.0  ;;  %v998_v47 = vmul.f32 %v958_v38, %v4132_v19  ;;  %v990_v12 = vmax.f32 %v982_v45, 0.0  ;;  %v1317_v45 = vsub.f32 %v4192_v33, %v4122_v35 }
 0x487   :  { %v1212_v41 = vpop.f32.mrf.mxu1  ;;  %v1947_v61 = vpop.f32.mrf.mxu0  ;;  %v1356_v42 = vand.u32 2147483647, %v1348_v56  ;;  %v594_v56 = vsub.f32 1.0, %v586_v58  ;;  %v1340_v11 = vmax.f32 %v1332_v25, 0.0  ;;  %v548_v0 = vsub.f32 1.0, %v540_v39 }
 0x488   :  { %v1948_v53 = vadd.f32 %v4187_v40, %v1947_v61  ;;  %v1354_v60 = vsub.f32 %v1212_v41, %v4179_v7  ;;  %v1320_v41 = vsub.f32 %v4171_v5, %v4197_v49  ;;  %v1006_v19 = vmul.f32 %v998_v47, %v990_v12 }
 0x489   :  { %v1364_v1 = vsub.f32 1.0, %v1356_v42  ;;  %v536_v12 = vsub.f32 %v3918_v55, %v4122_v35  ;;  %v1325_v39 = vand.u32 2147483647, %v1317_v45 }
 0x48a   :  { %v4213_v14 = vmul.f32 %v2080_v28, %v1948_v53  ;;  %v1342_v28 = vmax.f32 %v1334_v13, 0.0  ;;  %v1362_v48 = vand.u32 2147483647, %v1354_v60  ;;  %v1338_v13 = vsub.f32 1.0, %v1330_v16 }
 0x48b   :  { %v1372_v42 = vmax.f32 %v1364_v1, 0.0 }
 0x48c   :  { %4874 = vst [vmem:[#allocation43_spill] sm:$0xff] %v4213_v14  ;;  %v4218_v61 = vpop.f32.mrf.mxu3  ;;  %v1166_v4 = vpop.f32.mrf.mxu2  ;;  %v4222_v46 = vpack.i.bf16 %v4211_v8, %v4213_v14  ;;  %v561_v14 = vmax.f32 %v553_v27, 0.0  ;;  %v1370_v2 = vsub.f32 1.0, %v1362_v48  ;;  %v573_v27 = vsub.f32 %v4004_v17, %v4129_v34 }
 0x48d   :  { %v1352_v54 = vsub.f32 %v1166_v4, %v4200_v44  ;;  %v1346_v16 = vmax.f32 %v1338_v13, 0.0 }
 0x48e   :  { %4876 = vst [vmem:[#allocation45_spill] sm:$0xff] %v4222_v46  ;;  %v1328_v46 = vand.u32 2147483647, %v1320_v41  ;;  %v610_v5 = vmul.f32 %v561_v14, %v4011_v10  ;;  %v1378_v17 = vmax.f32 %v1370_v2, 0.0  ;;  %v581_v1 = vand.u32 2147483647, %v573_v27 }
 0x48f   :  { %v1309_v23 = vpop.f32.mrf.mxu1  ;;  %v1950_v53 = vpop.f32.mrf.mxu0  ;;  %v1360_v4 = vand.u32 2147483647, %v1352_v54 }
 0x490   :  { %v1382_v8 = vmul.f32 %v1342_v28, %v1309_v23  ;;  %v602_v28 = vmax.f32 %v594_v56, 0.0  ;;  %v1336_v38 = vsub.f32 1.0, %v1328_v46 }
 0x492   :  { %v4230_v51 = vmul.f32 %v1382_v8, %v1374_v15  ;;  %v1951_v15 = vadd.f32 %v4187_v40, %v1950_v53  ;;  %v2085_v8 = vpop.permute.xlu2 %2084  ;;  %v618_v25 = vmul.f32 %v610_v5, %v602_v28  ;;  %v1368_v53 = vsub.f32 1.0, %v1360_v4 }
 0x493   :  { %v1344_v13 = vmax.f32 %v1336_v38, 0.0  ;;  %v544_v4 = vand.u32 2147483647, %v536_v12  ;;  %v1333_v28 = vsub.f32 1.0, %v1325_v39 }
 0x494   :  { %v1186_v26 = vpop.f32.mrf.mxu3  ;;  %v1263_v60 = vpop.f32.mrf.mxu2  ;;  %v1014_v46 = vadd.f32 %v1006_v19, %v618_v25  ;;  %v4244_v56 = vmul.f32 %v2085_v8, %v1951_v15  ;;  %v1321_v19 = vsub.f32 %v4218_v61, %v4122_v35 }
 0x495   :  { %v1380_v58 = vmul.f32 %v1340_v11, %v1263_v60  ;;  %v1349_v54 = vsub.f32 %v1186_v26, %v4129_v34  ;;  %v1376_v60 = vmax.f32 %v1368_v53, 0.0 }
 0x497   :  { %v4238_v10 = vmul.f32 %v1380_v58, %v1372_v42  ;;  %v1312_v14 = vpop.f32.mrf.mxu1  ;;  %v1953_v48 = vpop.f32.mrf.mxu0  ;;  %v1357_v27 = vand.u32 2147483647, %v1349_v54  ;;  %v556_v42 = vmax.f32 %v548_v0, 0.0  ;;  %v589_v58 = vsub.f32 1.0, %v581_v1 }
 0x498   :  { %v1386_v41 = vmul.f32 %v1346_v16, %v1312_v14  ;;  %v1954_v23 = vadd.f32 %v4187_v40, %v1953_v48  ;;  %v552_v0 = vsub.f32 1.0, %v544_v4 }
 0x499   :  { %v605_v38 = vmul.f32 %v556_v42, %v4047_v24  ;;  %v1365_v45 = vsub.f32 1.0, %v1357_v27  ;;  %v597_v48 = vmax.f32 %v589_v58, 0.0  ;;  %v533_v58 = vsub.f32 %v3933_v59, %v4176_v36 }
 0x49a   :  { %v1394_v33 = vmul.f32 %v1386_v41, %v1378_v17  ;;  %v4247_v47 = vmul.f32 %v4167_v52, %v1954_v23  ;;  %v577_v52 = vsub.f32 %v4029_v20, %v4129_v34  ;;  %v1341_v17 = vmax.f32 %v1333_v28, 0.0 }
 0x49b   :  { %v1329_v41 = vand.u32 2147483647, %v1321_v19  ;;  %v613_v12 = vmul.f32 %v605_v38, %v597_v48  ;;  %v1373_v61 = vmax.f32 %v1365_v45, 0.0  ;;  %v560_v54 = vmax.f32 %v552_v0, 0.0 }
 0x49c   :  { %v4249_v11 = vadd.f32 %v1394_v33, %v1014_v46  ;;  %v1189_v5 = vpop.f32.mrf.mxu3  ;;  %v1266_v2 = vpop.f32.mrf.mxu2  ;;  %v4253_v55 = vpack.i.bf16 %v4244_v56, %v4247_v47  ;;  %v585_v25 = vand.u32 2147483647, %v577_v52  ;;  %v574_v59 = vsub.f32 %v3949_v63, %v4179_v7 }
 0x49d   :  { %v1384_v26 = vmul.f32 %v1344_v13, %v1266_v2  ;;  %v1353_v14 = vsub.f32 %v1189_v5, %v4129_v34  ;;  %v1009_v33 = vadd.f32 %v4159_v6, %v613_v12  ;;  %v1337_v24 = vsub.f32 1.0, %v1329_v41 }
 0x49e   :  { %v593_v46 = vsub.f32 1.0, %v585_v25  ;;  %v609_v2 = vmul.f32 %v560_v54, %v4065_v29  ;;  %v962_v29 = vsub.f32 %v4069_v31, %v4179_v7  ;;  %v541_v25 = vand.u32 2147483647, %v533_v58 }
 0x49f   :  { %v4259_v16 = vmul.f32 %v1384_v26, %v1376_v60  ;;  %v1497_v15 = vpop.f32.mrf.mxu1  ;;  %v4261_v8 = vpop.f32.mrf.mxu0  ;;  %v1361_v1 = vand.u32 2147483647, %v1353_v14  ;;  %v930_v26 = vsub.f32 %v4033_v22, %v4176_v36  ;;  %v1345_v4 = vmax.f32 %v1337_v24, 0.0 }
 0x4a0   :  { %v601_v42 = vmax.f32 %v593_v46, 0.0  ;;  %v1706_v12 = vsub.f32 %v1497_v15, %v4176_v36  ;;  %v932_v63 = vsub.f32 %v4067_v30, %v4197_v49  ;;  %v964_v30 = vsub.f32 %v4093_v50, %v4200_v44 }
 0x4a1   :  { %v1369_v60 = vsub.f32 1.0, %v1361_v1  ;;  %v938_v45 = vand.u32 2147483647, %v930_v26  ;;  %v582_v1 = vand.u32 2147483647, %v574_v59 }
 0x4a2   :  { %v617_v28 = vmul.f32 %v609_v2, %v601_v42  ;;  %v535_v42 = vsub.f32 %v3947_v62, %v4197_v49  ;;  %v576_v62 = vsub.f32 %v3986_v32, %v4200_v44 }
 0x4a3   :  { %v1377_v19 = vmax.f32 %v1369_v60, 0.0  ;;  %v946_v41 = vsub.f32 1.0, %v938_v45  ;;  %v590_v60 = vsub.f32 1.0, %v582_v1 }
 0x4a4   :  { %v1286_v20 = vpop.f32.mrf.mxu3  ;;  %v4265_v23 = vpop.f32.mrf.mxu2  ;;  %v1013_v14 = vadd.f32 %v4173_v18, %v617_v28 }
 0x4a5   :  { %v1381_v53 = vmul.f32 %v1341_v17, %v1286_v20  ;;  %v970_v20 = vand.u32 2147483647, %v962_v29  ;;  %v954_v54 = vmax.f32 %v946_v41, 0.0 }
 0x4a7   :  { %v1389_v13 = vmul.f32 %v1381_v53, %v1373_v61  ;;  %v1500_v39 = vpop.f32.mrf.mxu1  ;;  %v4268_v5 = vpop.f32.mrf.mxu0  ;;  %v549_v61 = vsub.f32 1.0, %v541_v25  ;;  %v978_v46 = vsub.f32 1.0, %v970_v20  ;;  %v994_v15 = vmul.f32 %v954_v54, %v4105_v43 }
 0x4a8   :  { %v1710_v28 = vsub.f32 %v1500_v39, %v4176_v36  ;;  %v972_v39 = vand.u32 2147483647, %v964_v30  ;;  %v584_v54 = vand.u32 2147483647, %v576_v62 }
 0x4a9   :  { %v4271_v27 = vadd.f32 %v1389_v13, %v1009_v33  ;;  %v1714_v33 = vand.u32 2147483647, %v1706_v12  ;;  %v557_v2 = vmax.f32 %v549_v61, 0.0  ;;  %v986_v58 = vmax.f32 %v978_v46, 0.0 }
 0x4aa   :  { %v1718_v59 = vand.u32 2147483647, %v1710_v28 }
 0x4ab   :  { %v1002_v45 = vmul.f32 %v994_v15, %v986_v58 }
 0x4ac   :  { %v1289_v52 = vpop.f32.mrf.mxu3  ;;  %v4277_v6 = vpop.f32.mrf.mxu2 }
 0x4ad   :  { %v1385_v38 = vmul.f32 %v1345_v4, %v1289_v52  ;;  %v606_v4 = vmul.f32 %v557_v2, %v3988_v9  ;;  %v1722_v52 = vsub.f32 1.0, %v1714_v33  ;;  %v1708_v50 = vsub.f32 %v4277_v6, %v4197_v49 }
 0x4ae   :  { %v1726_v33 = vsub.f32 1.0, %v1718_v59  ;;  %v980_v2 = vsub.f32 1.0, %v972_v39 }
 0x4af   :  { %v1393_v0 = vmul.f32 %v1385_v38, %v1377_v19  ;;  %v1597_v48 = vpop.f32.mrf.mxu1  ;;  %v4282_v22 = vpop.f32.mrf.mxu0  ;;  %v940_v19 = vand.u32 2147483647, %v932_v63  ;;  %v598_v38 = vmax.f32 %v590_v60, 0.0  ;;  %v1730_v25 = vmax.f32 %v1722_v52, 0.0 }
 0x4b0   :  { %v1738_v31 = vsub.f32 %v1597_v48, %v4179_v7  ;;  %v543_v48 = vand.u32 2147483647, %v535_v42  ;;  %v1716_v60 = vand.u32 2147483647, %v1708_v50  ;;  %v592_v52 = vsub.f32 1.0, %v584_v54 }
 0x4b1   :  { %v4286_v17 = vadd.f32 %v1393_v0, %v1013_v14  ;;  %v614_v9 = vmul.f32 %v606_v4, %v598_v38  ;;  %v948_v36 = vsub.f32 1.0, %v940_v19  ;;  %v1734_v19 = vmax.f32 %v1726_v33, 0.0 }
 0x4b2   :  { %v1746_v26 = vand.u32 2147483647, %v1738_v31  ;;  %v551_v31 = vsub.f32 1.0, %v543_v48  ;;  %v988_v38 = vmax.f32 %v980_v2, 0.0 }
 0x4b3   :  { %v1010_v12 = vadd.f32 %v1002_v45, %v614_v9  ;;  %v956_v6 = vmax.f32 %v948_v36, 0.0  ;;  %v1724_v45 = vsub.f32 1.0, %v1716_v60  ;;  %v600_v9 = vmax.f32 %v592_v52, 0.0 }
 0x4b4   :  { %v4290_v53 = vpop.f32.mrf.mxu3  ;;  %v4292_v18 = vpop.f32.mrf.mxu2  ;;  %v1754_v29 = vsub.f32 1.0, %v1746_v26  ;;  %v559_v58 = vmax.f32 %v551_v31, 0.0 }
 0x4b5   :  { %v1398_v32 = vadd.f32 %v4230_v51, %v1010_v12  ;;  %v996_v51 = vmul.f32 %v956_v6, %v4143_v3  ;;  %v1732_v50 = vmax.f32 %v1724_v45, 0.0 }
 0x4b6   :  { %v608_v30 = vmul.f32 %v559_v58, %v4031_v21  ;;  %v1817_v21 = vld [vmem:[%s4816_s1 + $0xd0] sm:$0xff] }
 0x4b7   :  { %v1600_v24 = vpop.f32.mrf.mxu1  ;;  %v4296_v13 = vpop.f32.mrf.mxu0 }
 0x4b8   :  { %v1742_v14 = vsub.f32 %v1600_v24, %v4179_v7  ;;  %v1762_v7 = vmax.f32 %v1754_v29, 0.0  ;;  %v1816_v24 = vld [vmem:[%s4816_s1 + $0xc8] sm:$0xff]  ;;  %v1705_v29 = vsub.f32 %v4290_v53, %v4122_v35  ;;  %v616_v39 = vmul.f32 %v608_v30, %v600_v9 }
 0x4b9   :  { %3092 = vmatmul.msk.f32.vlgmr.msrb.gmra.mxu2 %vm113_vm4, %v1816_v24 }
 0x4ba   :  { %v1750_v61 = vand.u32 2147483647, %v1742_v14 }
 0x4bc   :  { %v4306_v43 = vpop.f32.mrf.mxu3  ;;  %v1554_v0 = vpop.f32.mrf.mxu2  ;;  %v1758_v15 = vsub.f32 1.0, %v1750_v61 }
 0x4bd   :  { %v1740_v46 = vsub.f32 %v1554_v0, %v4200_v44  ;;  %v1709_v33 = vsub.f32 %v4306_v43, %v4122_v35 }
 0x4be   :  { %v1766_v48 = vmax.f32 %v1758_v15, 0.0 }
 0x4bf   :  { %v1697_v41 = vpop.f32.mrf.mxu1  ;;  %v4312_v20 = vpop.f32.mrf.mxu0  ;;  %v1748_v28 = vand.u32 2147483647, %v1740_v46 }
 0x4c0   :  { %v1770_v1 = vmul.f32 %v1730_v25, %v1697_v41  ;;  %v1004_v25 = vmul.f32 %v996_v51, %v988_v38  ;;  %v1713_v41 = vand.u32 2147483647, %v1705_v29 }
 0x4c1   :  { %v1756_v59 = vsub.f32 1.0, %v1748_v28  ;;  %3093 = vmatmul.msk.f32.gmra.mxu2 %vm113_vm4, %v1817_v21 }
 0x4c2   :  { %v1778_v63 = vmul.f32 %v1770_v1, %v1762_v7  ;;  %v1012_v61 = vadd.f32 %v1004_v25, %v616_v39  ;;  %v4878_v39 = vld [vmem:[#allocation40_spill] sm:$0xff] }
 0x4c3   :  { %v1764_v1 = vmax.f32 %v1756_v59, 0.0 }
 0x4c4   :  { %v4320_v26 = vadd.f32 %v1778_v63, %v1398_v32  ;;  %v1574_v42 = vpop.f32.mrf.mxu3  ;;  %v4322_v4 = vpop.f32.mrf.mxu2  ;;  %v1400_v46 = vadd.f32 %v4259_v16, %v1012_v61  ;;  %v1721_v32 = vsub.f32 1.0, %v1713_v41  ;;  %v1820_v41 = vld [vmem:[%s4816_s1 + $0xe8] sm:$0xff]  ;;  %v1810_v61 = vld [vmem:[%s4816_s1 + $0x98] sm:$0xff] }
 0x4c5   :  { %v1737_v36 = vsub.f32 %v1574_v42, %v4129_v34  ;;  %v1717_v42 = vand.u32 2147483647, %v1709_v33  ;;  %3086 = vmatmul.msk.f32.vlgmr.msrb.gmra.mxu1 %vm113_vm4, %v1810_v61  ;;  %v1966_v33 = vadd.f32 %v4187_v40, %v4296_v13  ;;  %v1822_v13 = vld [vmem:[%s4816_s1 + $0xf8] sm:$0xff] }
 0x4c6   :  { %v1729_v15 = vmax.f32 %v1721_v32, 0.0  ;;  %v1821_v32 = vld [vmem:[%s4816_s1 + $0xf0] sm:$0xff] }
 0x4c7   :  { %v1700_v14 = vpop.f32.mrf.mxu1  ;;  %v4328_v0 = vpop.f32.mrf.mxu0  ;;  %v1745_v31 = vand.u32 2147483647, %v1737_v36  ;;  %v1725_v43 = vsub.f32 1.0, %v1717_v42  ;;  %v4882_v42 = vld [vmem:[#allocation36_spill] sm:$0xff] }
 0x4c8   :  { %v1774_v62 = vmul.f32 %v1734_v19, %v1700_v14  ;;  %v1819_v14 = vld [vmem:[%s4816_s1 + $0xe0] sm:$0xff] }
 0x4c9   :  { %v1753_v6 = vsub.f32 1.0, %v1745_v31 }
 0x4ca   :  { %v1782_v3 = vmul.f32 %v1774_v62, %v1766_v48  ;;  %v1733_v48 = vmax.f32 %v1725_v43, 0.0  ;;  %v1960_v62 = vadd.f32 %v4187_v40, %v4268_v5  ;;  %v4883_v43 = vld [vmem:[#allocation27_spill] sm:$0xff] }
 0x4cb   :  { %v1761_v58 = vmax.f32 %v1753_v6, 0.0 }
 0x4cc   :  { %v4336_v53 = vadd.f32 %v1782_v3, %v4249_v11  ;;  %v1577_v12 = vpop.f32.mrf.mxu3  ;;  %v1654_v7 = vpop.f32.mrf.mxu2  ;;  %v1818_v11 = vld [vmem:[%s4816_s1 + $0xd8] sm:$0xff]  ;;  %v4877_v3 = vld [vmem:[#allocation44_spill] sm:$0xff] }
 0x4cd   :  { %v1772_v54 = vmul.f32 %v1732_v50, %v1654_v7  ;;  %v1741_v2 = vsub.f32 %v1577_v12, %v4129_v34  ;;  %3094 = vmatmul.msk.f32.gmra.mxu2 %vm113_vm4, %v1818_v11  ;;  %v4374_v21 = vmul.f32 %v4877_v3, %v1960_v62  ;;  %v4885_v62 = vld [vmem:[#allocation31_spill] sm:$0xff] }
 0x4cf   :  { %v1780_v63 = vmul.f32 %v1772_v54, %v1764_v1  ;;  %v1974_v24 = vpop.f32.mrf.mxu0  ;;  %v1749_v52 = vand.u32 2147483647, %v1741_v2  ;;  %v4879_v1 = vld [vmem:[#allocation29_spill] sm:$0xff]  ;;  %v4880_v54 = vld [vmem:[#allocation35_spill] sm:$0xff] }
 0x4d0   :  { %v1975_v35 = vadd.f32 %v4187_v40, %v1974_v24  ;;  %v1963_v24 = vadd.f32 %v4187_v40, %v4282_v22  ;;  %v4881_v2 = vld [vmem:[#allocation37_spill] sm:$0xff] }
 0x4d1   :  { %v4342_v60 = vadd.f32 %v1780_v63, %v1400_v46  ;;  %v1757_v30 = vsub.f32 1.0, %v1749_v52  ;;  %v2239_v11 = vmul.f32 %v4881_v2, %v1966_v33 }
 0x4d2   :  { %v4354_v45 = vmul.f32 %v4126_v57, %v1975_v35  ;;  %v1812_v35 = vld [vmem:[%s4816_s1 + $0xa8] sm:$0xff] }
 0x4d3   :  { %v1765_v57 = vmax.f32 %v1757_v30, 0.0  ;;  %v1972_v30 = vadd.f32 %v4187_v40, %v4328_v0  ;;  %v1813_v0 = vld [vmem:[%s4816_s1 + $0xb0] sm:$0xff] }
 0x4d4   :  { %v1674_v16 = vpop.f32.mrf.mxu3 }
 0x4d5   :  { %v1769_v51 = vmul.f32 %v1729_v15, %v1674_v16  ;;  %3095 = vmatmul.msk.f32.gmra.mxu2 %vm113_vm4, %v1819_v14  ;;  %v1811_v15 = vld [vmem:[%s4816_s1 + $0xa0] sm:$0xff]  ;;  %v2238_v16 = vmul.f32 %v4882_v42, %v1963_v24 }
 0x4d6   :  { %3087 = vmatmul.msk.f32.gmra.mxu1 %vm113_vm4, %v1811_v15 }
 0x4d7   :  { %v1777_v28 = vmul.f32 %v1769_v51, %v1761_v58  ;;  %v1977_v19 = vpop.f32.mrf.mxu0  ;;  %v4422_v22 = vpack.i.bf16 %v2238_v16, %v2239_v11 }
 0x4d8   :  { %v1978_v34 = vadd.f32 %v4187_v40, %v1977_v19  ;;  %v4884_v19 = vld [vmem:[#allocation30_spill] sm:$0xff] }
 0x4d9   :  { %v4351_v38 = vadd.f32 %v1777_v28, %v4271_v27 }
 0x4da   :  { %v4357_v29 = vmul.f32 %v4157_v37, %v1978_v34  ;;  %v1957_v37 = vadd.f32 %v4187_v40, %v4261_v8 }
 0x4dc   :  { %v1677_v9 = vpop.f32.mrf.mxu3  ;;  %v4367_v27 = vpack.i.bf16 %v4354_v45, %v4357_v29  ;;  %v4380_v50 = vmul.f32 %v4878_v39, %v1957_v37  ;;  %v4888_v37 = vld [vmem:[#allocation7_spill] sm:$0xff]  ;;  %v4891_v39 = vld [vmem:[#allocation32_spill] sm:$0xff] }
 0x4dd   :  { %v1773_v25 = vmul.f32 %v1733_v48, %v1677_v9  ;;  %3096 = vmatmul.msk.f32.gmra.mxu2 %vm113_vm4, %v1820_v41  ;;  %v1969_v48 = vadd.f32 %v4187_v40, %v4312_v20  ;;  %v4886_v9 = vld [vmem:[#allocation8_spill] sm:$0xff]  ;;  %v4892_v41 = vld [vmem:[#allocation17_spill] sm:$0xff] }
 0x4de   :  { %3146 = vrot.lane.b32.xlu1 %v4367_v27, %s3414_s9  ;;  %v4388_v8 = vpack.i.bf16 %v4380_v50, %v4374_v21  ;;  %3088 = vmatmul.msk.f32.gmra.mxu1 %vm113_vm4, %v1812_v35 }
 0x4df   :  { %v1781_v59 = vmul.f32 %v1773_v25, %v1765_v57  ;;  %v1980_v36 = vpop.f32.mrf.mxu0  ;;  %v530_v57 = vsub.f32 %v4886_v9, %v4885_v62  ;;  %v4887_v25 = vld [vmem:[#allocation45_spill] sm:$0xff] }
 0x4e0   :  { %v1981_v12 = vadd.f32 %v4187_v40, %v1980_v36  ;;  %v4890_v36 = vld [vmem:[#allocation34_spill] sm:$0xff] }
 0x4e1   :  { %v4377_v5 = vadd.f32 %v1781_v59, %v4286_v17  ;;  %v927_v59 = vsub.f32 %v4888_v37, %v4885_v62  ;;  %v2241_v3 = vmul.f32 %v4890_v36, %v1972_v30  ;;  %v538_v61 = vand.u32 2147483647, %v530_v57  ;;  %v4898_v57 = vld [vmem:[#allocation24_spill] sm:$0xff]  ;;  %v1815_v37 = vld [vmem:[%s4816_s1 + $0xc0] sm:$0xff] }
 0x4e2   :  { %v2244_v31 = vmul.f32 %v4879_v1, %v1981_v12  ;;  %v571_v12 = vsub.f32 %v4892_v41, %v4891_v39 }
 0x4e3   :  { %v935_v1 = vand.u32 2147483647, %v927_v59  ;;  %v546_v15 = vsub.f32 1.0, %v538_v61  ;;  %v2060_v61 = vld [vmem:[%s4817_s2 + $0xa0] sm:$0xff] }
 0x4e5   :  { %3097 = vmatmul.msk.f32.gmra.mxu2 %vm113_vm4, %v1821_v32 }
 0x4e6   :  { %3161 = vrot.lane.b32.xlu1 %v4388_v8, %s3414_s9  ;;  %3089 = vmatmul.msk.f32.gmra.mxu1 %vm113_vm4, %v1813_v0 }
 0x4e7   :  { %v1983_v17 = vpop.f32.mrf.mxu0 }
 0x4e8   :  { %v1984_v7 = vadd.f32 %v4187_v40, %v1983_v17  ;;  %v4893_v17 = vld [vmem:[#allocation41_spill] sm:$0xff] }
 0x4ea   :  { %v2245_v46 = vmul.f32 %v4880_v54, %v1984_v7  ;;  %v2240_v7 = vmul.f32 %v4893_v17, %v1969_v48  ;;  %v4894_v54 = vld [vmem:[#allocation11_spill] sm:$0xff]  ;;  %v4897_v48 = vld [vmem:[#allocation13_spill] sm:$0xff]  ;;  %v2071_v17 = vld [vmem:[%s4817_s2 + $0xf8] sm:$0xff] }
 0x4eb   :  { %v959_v32 = vsub.f32 %v4894_v54, %v4891_v39  ;;  %v2065_v54 = vld [vmem:[%s4817_s2 + $0xc8] sm:$0xff] }
 0x4ec   :  { %v4406_v63 = vpack.i.bf16 %v2244_v31, %v2245_v46  ;;  %v3150_v24 = vpack.i.bf16 %v2240_v7, %v2241_v3 }
 0x4ed   :  { %3098 = vmatmul.msk.f32.gmra.mxu2 %vm113_vm4, %v1822_v13  ;;  %v967_v42 = vand.u32 2147483647, %v959_v32  ;;  %v2057_v32 = vld [vmem:[%s4817_s2 + $0x88] sm:$0xff] }
 0x4ee   :  { %3141 = vrot.lane.b32.xlu0 %v4406_v63, %s3414_s9 }
 0x4ef   :  { %v1986_v6 = vpop.f32.mrf.mxu0  ;;  %v975_v35 = vsub.f32 1.0, %v967_v42 }
 0x4f0   :  { %v1987_v58 = vadd.f32 %v4187_v40, %v1986_v6  ;;  %v579_v6 = vand.u32 2147483647, %v571_v12  ;;  %v4901_v12 = vld [vmem:[#allocation42_spill] sm:$0xff] }
 0x4f2   :  { %v2246_v28 = vmul.f32 %v4883_v43, %v1987_v58  ;;  %v587_v58 = vsub.f32 1.0, %v579_v6 }
 0x4f6   :  { %3156 = vrot.lane.b32.xlu0 %v4422_v22, %s3414_s9 }
 0x4f7   :  { %v1989_v52 = vpop.f32.mrf.mxu0 }
 0x4f8   :  { %v1990_v51 = vadd.f32 %v4187_v40, %v1989_v52  ;;  %v4889_v40 = vld [vmem:[#allocation16_spill] sm:$0xff] }
 0x4f9   :  { %v1315_v20 = vsub.f32 %v4889_v40, %v4885_v62 }
 0x4fa   :  { %v2247_v34 = vmul.f32 %v4884_v19, %v1990_v51 }
 0x4fb   :  { %v1323_v33 = vand.u32 2147483647, %v1315_v20 }
 0x4fc   :  { %2269 = vmatpush.msra.mxu2 %v2247_v34  ;;  %v3135_v14 = vpack.i.bf16 %v2246_v28, %v2247_v34  ;;  %v4896_v34 = vld [vmem:[#allocation5_spill] sm:$0xff] }
 0x4fd   :  { %v1331_v13 = vsub.f32 1.0, %v1323_v33  ;;  %v2058_v33 = vld [vmem:[%s4817_s2 + $0x90] sm:$0xff] }
 0x4fe   :  { %3136 = vrot.lane.b32.xlu2 %v3135_v14, %s3414_s9  ;;  %2270 = vmatpush.msra.mxu2 %v2246_v28  ;;  %v595_v28 = vmax.f32 %v587_v58, 0.0 }
 0x4ff   :  { %3176 = vrot.lane.b32.xlu1 %v3135_v14, %s3417_s23  ;;  %3171 = vrot.lane.b32.xlu0 %v4887_v25, %s3414_s9  ;;  %v1339_v43 = vmax.f32 %v1331_v13, 0.0 }
 0x500   :  { %2271 = vmatpush.msra.mxu2 %v2245_v46  ;;  %v4895_v46 = vld [vmem:[#allocation21_spill] sm:$0xff] }
 0x501   :  { %v1347_v2 = vsub.f32 %v4895_v46, %v4891_v39  ;;  %v1379_v0 = vmul.f32 %v1339_v43, %v4898_v57  ;;  %v4903_v43 = vld [vmem:[#allocation14_spill] sm:$0xff] }
 0x502   :  { %2272 = vmatpush.msra.mxu2 %v2244_v31  ;;  %v1814_v31 = vld [vmem:[%s4816_s1 + $0xb8] sm:$0xff] }
 0x503   :  { %v1355_v52 = vand.u32 2147483647, %v1347_v2  ;;  %3090 = vmatmul.msk.f32.gmra.mxu1 %vm113_vm4, %v1814_v31  ;;  %v2059_v31 = vld [vmem:[%s4817_s2 + $0x98] sm:$0xff] }
 0x504   :  { %2273 = vmatpush.msra.mxu2 %v4357_v29  ;;  %v943_v29 = vsub.f32 1.0, %v935_v1  ;;  %v2061_v1 = vld [vmem:[%s4817_s2 + $0xa8] sm:$0xff] }
 0x505   :  { %v1363_v19 = vsub.f32 1.0, %v1355_v52  ;;  %v4902_v52 = vld [vmem:[#allocation25_spill] sm:$0xff] }
 0x506   :  { %3151 = vrot.lane.b32.xlu2 %v3150_v24, %s3414_s9  ;;  %2274 = vmatpush.msra.mxu2 %v4354_v45  ;;  %v554_v45 = vmax.f32 %v546_v15, 0.0  ;;  %v951_v51 = vmax.f32 %v943_v29, 0.0 }
 0x507   :  { %3191 = vrot.lane.b32.xlu1 %v3150_v24, %s3417_s23  ;;  %3186 = vrot.lane.b32.xlu0 %v4367_v27, %s3417_s23  ;;  %v1371_v40 = vmax.f32 %v1363_v19, 0.0 }
 0x508   :  { %2275 = vmatpush.msra.mxu2 %v2241_v3  ;;  %v603_v30 = vmul.f32 %v554_v45, %v4896_v34  ;;  %v991_v9 = vmul.f32 %v951_v51, %v4897_v48  ;;  %v4899_v3 = vld [vmem:[#allocation43_spill] sm:$0xff]  ;;  %v928_v45 = vsub.f32 %v4902_v52, %v4197_v49 }
 0x509   :  { %v1387_v20 = vmul.f32 %v1379_v0, %v1371_v40 }
 0x50a   :  { %2276 = vmatpush.msra.mxu2 %v2240_v7  ;;  %v611_v59 = vmul.f32 %v603_v30, %v595_v28  ;;  %v2064_v7 = vld [vmem:[%s4817_s2 + $0xc0] sm:$0xff]  ;;  %v531_v28 = vsub.f32 %v4903_v43, %v4197_v49  ;;  %v936_v34 = vand.u32 2147483647, %v928_v45  ;;  %v4904_v30 = vld [vmem:[#allocation28_spill] sm:$0xff] }
 0x50b   :  { %3091 = vmatmul.msk.f32.gmra.mxu1 %vm113_vm4, %v1815_v37  ;;  %v960_v48 = vsub.f32 %v4904_v30, %v4200_v44  ;;  %v4905_v37 = vld [vmem:[#allocation18_spill] sm:$0xff] }
 0x50c   :  { %2277 = vmatpush.msra.mxu2 %v2239_v11  ;;  %v1807_v11 = vld [vmem:[%s4816_s1 + $0x80] sm:$0xff] }
 0x50d   :  { %3083 = vmatmul.msk.f32.gmra.mxu0 %vm113_vm4, %v1807_v11  ;;  %v539_v11 = vand.u32 2147483647, %v531_v28 }
 0x50e   :  { %3166 = vrot.lane.b32.xlu2 %v4253_v55, %s3414_s9  ;;  %2278 = vmatpush.msra.mxu2 %v2238_v16  ;;  %v983_v16 = vmax.f32 %v975_v35, 0.0  ;;  %v2056_v35 = vld [vmem:[%s4817_s2 + $0x80] sm:$0xff] }
 0x50f   :  { %3201 = vrot.lane.b32.xlu1 %v4388_v8, %s3417_s23  ;;  %3211 = vrot.lane.b32.xlu0 %v3135_v14, %s3420_s25 }
 0x510   :  { %2279 = vmatpush.msra.mxu2 %v4374_v21  ;;  %v999_v14 = vmul.f32 %v991_v9, %v983_v16  ;;  %v1704_v9 = vsub.f32 %v4265_v23, %v4197_v49  ;;  %v572_v16 = vsub.f32 %v4905_v37, %v4200_v44  ;;  %v1736_v49 = vsub.f32 %v4292_v18, %v4200_v44 }
 0x512   :  { %2280 = vmatpush.msra.mxu2 %v4380_v50  ;;  %v1007_v36 = vadd.f32 %v999_v14, %v611_v59  ;;  %v1808_v50 = vld [vmem:[%s4816_s1 + $0x88] sm:$0xff] }
 0x514   :  { %2281 = vmatpush.msra.mxu2 %v4247_v47  ;;  %v1395_v21 = vadd.f32 %v1387_v20, %v1007_v36  ;;  %v4900_v47 = vld [vmem:[#allocation38_spill] sm:$0xff]  ;;  %v944_v36 = vsub.f32 1.0, %v936_v34 }
 0x515   :  { %3084 = vmatmul.msk.f32.gmra.mxu0 %vm113_vm4, %v1808_v50  ;;  %v1712_v50 = vand.u32 2147483647, %v1704_v9 }
 0x516   :  { %3181 = vrot.lane.b32.xlu2 %v4406_v63, %s3417_s23  ;;  %2282 = vmatpush.msra.mxu2 %v4244_v56  ;;  %v1783_v41 = vadd.f32 %v4900_v47, %v1395_v21  ;;  %v1809_v56 = vld [vmem:[%s4816_s1 + $0x90] sm:$0xff]  ;;  %v968_v21 = vand.u32 2147483647, %v960_v48  ;;  %v580_v47 = vand.u32 2147483647, %v572_v16 }
 0x517   :  { %3221 = vrot.lane.b32.xlu1 %v4367_v27, %s3420_s25  ;;  %3216 = vrot.lane.b32.xlu0 %v4253_v55, %s3417_s23  ;;  %v2069_v27 = vld [vmem:[%s4817_s2 + $0xe8] sm:$0xff] }
 0x518   :  { %2283 = vmatpush.msra.mxu2 %v4899_v3  ;;  %v547_v3 = vsub.f32 1.0, %v539_v11 }
 0x51a   :  { %2284 = vmatpush.msra.mxu2 %v4901_v12  ;;  %v952_v12 = vmax.f32 %v944_v36, 0.0 }
 0x51b   :  { %2285 = vmatmul.f32.vlgmr.msra.gmra.mxu2 %v1783_v41 }
 0x51d   :  { %3085 = vmatmul.msk.f32.gmra.mxu0 %vm113_vm4, %v1809_v56  ;;  %v976_v56 = vsub.f32 1.0, %v968_v21 }
 0x51e   :  { %3196 = vrot.lane.b32.xlu2 %v4422_v22, %s3417_s23 }
 0x51f   :  { %3236 = vrot.lane.b32.xlu1 %v4422_v22, %s3420_s25  ;;  %3231 = vrot.lane.b32.xlu0 %v3150_v24, %s3420_s25  ;;  %v2070_v22 = vld [vmem:[%s4817_s2 + $0xf0] sm:$0xff] }
 0x520   :  { %v2062_v24 = vld [vmem:[%s4817_s2 + $0xb0] sm:$0xff] }
 0x526   :  { %3206 = vrot.lane.b32.xlu2 %v4406_v63, %s3420_s25  ;;  %v2066_v63 = vld [vmem:[%s4817_s2 + $0xd0] sm:$0xff] }
 0x527   :  { %3251 = vrot.lane.b32.xlu1 %v4887_v25, %s3420_s25  ;;  %3246 = vrot.lane.b32.xlu0 %v4253_v55, %s3420_s25  ;;  %v2067_v55 = vld [vmem:[%s4817_s2 + $0xd8] sm:$0xff] }
 0x52e   :  { %3226 = vrot.lane.b32.xlu2 %v4887_v25, %s3417_s23  ;;  %v2063_v25 = vld [vmem:[%s4817_s2 + $0xb8] sm:$0xff] }
 0x52f   :  { %2219 = vperm.xlu1 %3133, %v2069_v27   ;;  %2224 = vperm.xlu0 %3132, %v2070_v22   ;;  %v1720_v27 = vsub.f32 1.0, %v1712_v50  ;;  %v1744_v22 = vand.u32 2147483647, %v1736_v49 }
 0x536   :  { %3241 = vrot.lane.b32.xlu2 %v4388_v8, %s3420_s25  ;;  %v2068_v8 = vld [vmem:[%s4817_s2 + $0xe0] sm:$0xff] }
 0x537   :  { %2204 = vperm.xlu1 %3133, %v2066_v63   ;;  %2209 = vperm.xlu0 %3132, %v2067_v55   ;;  %v555_v55 = vmax.f32 %v547_v3, 0.0 }
 0x53c   :  { %v4567_v15 = vpop.f32.mrf.mxu2 }
 0x53e   :  { %2229 = vperm.xlu2 %3134, %v2071_v17   ;;  %v588_v17 = vsub.f32 1.0, %v580_v47 }
 0x53f   :  { %2189 = vperm.xlu1 %3133, %v2063_v25   ;;  %2194 = vperm.xlu0 %3132, %v2064_v7   ;;  %v4906_v25 = vld [vmem:[#allocation33_spill] sm:$0xff] }
 0x540   :  { %v992_v7 = vmul.f32 %v952_v12, %v4906_v25 }
 0x542   :  { %v4597_v43 = vpop.f32.mrf.mxu1 }
 0x544   :  { %v4580_v0 = vpop.f32.mrf.mxu2 }
 0x546   :  { %2214 = vperm.xlu2 %3134, %v2068_v8  }
 0x547   :  { %2174 = vperm.xlu1 %3133, %v2060_v61   ;;  %2179 = vperm.xlu0 %3132, %v2061_v1   ;;  %v4907_v1 = vld [vmem:[#allocation22_spill] sm:$0xff] }
 0x54e   :  { %2199 = vperm.xlu2 %3134, %v2065_v54   ;;  %v604_v54 = vmul.f32 %v555_v55, %v4907_v1 }
 0x54f   :  { %2159 = vperm.xlu1 %3133, %v2057_v32   ;;  %2164 = vperm.xlu0 %3132, %v2058_v33   ;;  %v984_v32 = vmax.f32 %v976_v56, 0.0  ;;  %v1728_v33 = vmax.f32 %v1720_v27, 0.0 }
 0x550   :  { %v3147_v29 = vpop.permute.xlu1 %3146 }
 0x551   :  { %v3148_v19 = vunpack.i.l.bf16 %v3147_v29  ;;  %v3149_v57 = vunpack.i.h.bf16 %v3147_v29  ;;  %v1768_v29 = vmul.f32 %v1728_v33, %v4322_v4 }
 0x556   :  { %2184 = vperm.xlu2 %3134, %v2062_v24   ;;  %v1752_v24 = vsub.f32 1.0, %v1744_v22 }
 0x558   :  { %v3137_v6 = vpop.permute.xlu2 %3136  ;;  %v3162_v14 = vpop.permute.xlu1 %3161 }
 0x559   :  { %v3138_v46 = vunpack.i.l.bf16 %v3137_v6  ;;  %v3139_v2 = vunpack.i.h.bf16 %v3137_v6  ;;  %v3163_v61 = vunpack.i.l.bf16 %v3162_v14  ;;  %v4592_v6 = vpop.f32.mrf.mxu2 }
 0x55b   :  { %2353 = vmatpush.msrb.mxu3 %v3138_v46  ;;  %v3164_v46 = vunpack.i.h.bf16 %v3162_v14 }
 0x55d   :  { %2354 = vmatpush.msrb.mxu3 %v3139_v2  ;;  %v596_v2 = vmax.f32 %v588_v17, 0.0 }
 0x55e   :  { %2169 = vperm.xlu2 %3134, %v2059_v31   ;;  %v1000_v31 = vmul.f32 %v992_v7, %v984_v32  ;;  %v4617_v32 = vld [vmem:[%s4821_s6] ss:$0 sm:$0xff] }
 0x560   :  { %v3152_v42 = vpop.permute.xlu2 %3151  ;;  %v3142_v13 = vpop.permute.xlu0 %3141 }
 0x561   :  { %v3143_v58 = vunpack.i.l.bf16 %v3142_v13  ;;  %v3144_v51 = vunpack.i.h.bf16 %v3142_v13  ;;  %v3153_v20 = vunpack.i.l.bf16 %v3152_v42  ;;  %v3154_v23 = vunpack.i.h.bf16 %v3152_v42  ;;  %v2028_v9 = vpop.f32.mrf.mxu2 }
 0x562   :  { %v612_v13 = vmul.f32 %v604_v54, %v596_v2  ;;  %v2029_v33 = vadd.f32 %v4617_v32, %v2028_v9 }
 0x563   :  { %2355 = vmatpush.msrb.mxu3 %v3143_v58  ;;  %v1760_v58 = vmax.f32 %v1752_v24, 0.0 }
 0x564   :  { %v1008_v45 = vadd.f32 %v1000_v31, %v612_v13 }
 0x565   :  { %2356 = vmatpush.msrb.mxu3 %v3144_v51  ;;  %v1776_v51 = vmul.f32 %v1768_v29, %v1760_v58 }
 0x566   :  { %2154 = vperm.xlu2 %3134, %v2056_v35   ;;  %v1396_v4 = vadd.f32 %v4238_v10, %v1008_v45 }
 0x567   :  { %2357 = vmatpush.msrb.mxu3 %v3148_v19 }
 0x568   :  { %v3167_v59 = vpop.permute.xlu2 %3166  ;;  %v3157_v40 = vpop.permute.xlu0 %3156  ;;  %v1784_v48 = vadd.f32 %v1776_v51, %v1396_v4 }
 0x569   :  { %2358 = vmatpush.msrb.mxu3 %v3149_v57  ;;  %v3158_v41 = vunpack.i.l.bf16 %v3157_v40  ;;  %v3159_v63 = vunpack.i.h.bf16 %v3157_v40  ;;  %v3168_v42 = vunpack.i.l.bf16 %v3167_v59  ;;  %v3169_v52 = vunpack.i.h.bf16 %v3167_v59  ;;  %v4606_v59 = vpop.f32.mrf.mxu1 }
 0x56b   :  { %2359 = vmatpush.msrb.mxu3 %v3153_v20  ;;  %v2031_v20 = vpop.f32.mrf.mxu2 }
 0x56c   :  { %v2032_v24 = vadd.f32 %v4617_v32, %v2031_v20 }
 0x56d   :  { %2360 = vmatpush.msrb.mxu3 %v3154_v23 }
 0x56f   :  { %2361 = vmatpush.msrb.mxu3 %v3158_v41 }
 0x570   :  { %v4587_v8 = vpop.permute.xlu2 %3181 }
 0x571   :  { %v4589_v44 = vpop.permute.xlu1 %3176  ;;  %v3172_v18 = vpop.permute.xlu0 %3171  ;;  %2362 = vmatpush.msrb.mxu3 %v3159_v63 }
 0x572   :  { %v3173_v28 = vunpack.i.l.bf16 %v3172_v18  ;;  %v3174_v30 = vunpack.i.h.bf16 %v3172_v18  ;;  %v4612_v3 = vpop.f32.mrf.mxu1 }
 0x573   :  { %2363 = vmatpush.msrb.mxu3 %v3163_v61  ;;  %v2034_v47 = vpop.f32.mrf.mxu2 }
 0x575   :  { %2364 = vmatpush.msrb.mxu3 %v3164_v46  ;;  %v2035_v46 = vadd.f32 %v4617_v32, %v2034_v47  ;;  %v2020_v47 = vadd.f32 %v4617_v32, %v4567_v15 }
 0x577   :  { %2365 = vmatpush.msrb.mxu3 %v3168_v42 }
 0x578   :  { %v4595_v35 = vpop.permute.xlu2 %3196 }
 0x579   :  { %v4599_v19 = vpop.permute.xlu1 %3191  ;;  %v4601_v34 = vpop.permute.xlu0 %3186  ;;  %2366 = vmatpush.msrb.mxu3 %v3169_v52 }
 0x57a   :  { %v2010_v55 = vpop.f32.mrf.mxu1 }
 0x57b   :  { %2367 = vmatpush.msrb.mxu3 %v3173_v28  ;;  %v2037_v1 = vpop.f32.mrf.mxu2 }
 0x57c   :  { %v2038_v2 = vadd.f32 %v4617_v32, %v2037_v1  ;;  %v2265_v1 = vld [vmem:[%s4822_s7 + $0x8] sm:$0xff] }
 0x57d   :  { %2368 = vmatpush.msrb.mxu3 %v3174_v30  ;;  %2391 = vmatpush.msra.mxu1 %v2265_v1 }
 0x57e   :  { %2369 = vmatmul.f32.vlgmr.msrb.gmra.mxu3 %v1784_v48 }
 0x580   :  { %v3207_v57 = vpop.permute.xlu2 %3206 }
 0x581   :  { %v4604_v11 = vpop.permute.xlu1 %3201  ;;  %v3212_v37 = vpop.permute.xlu0 %3211  ;;  %v3208_v14 = vunpack.i.l.bf16 %v3207_v57  ;;  %v3209_v36 = vunpack.i.h.bf16 %v3207_v57 }
 0x582   :  { %v3213_v16 = vunpack.i.l.bf16 %v3212_v37  ;;  %v3214_v40 = vunpack.i.h.bf16 %v3212_v37  ;;  %v2013_v13 = vpop.f32.mrf.mxu1  ;;  %v2023_v37 = vadd.f32 %v4617_v32, %v4580_v0 }
 0x584   :  { %2559 = vmatpush.msra.mxu3 %v3213_v16  ;;  %v2026_v16 = vadd.f32 %v4617_v32, %v4592_v6 }
 0x586   :  { %2560 = vmatpush.msra.mxu3 %v3214_v40 }
 0x588   :  { %2561 = vmatpush.msra.mxu3 %v3208_v14  ;;  %v4608_v10 = vpop.permute.xlu2 %3226 }
 0x589   :  { %v3222_v21 = vpop.permute.xlu1 %3221  ;;  %v4610_v50 = vpop.permute.xlu0 %3216 }
 0x58a   :  { %v3223_v49 = vunpack.i.l.bf16 %v3222_v21  ;;  %2562 = vmatpush.msra.mxu3 %v3209_v36  ;;  %v3224_v23 = vunpack.i.h.bf16 %v3222_v21  ;;  %v1992_v40 = vpop.f32.mrf.mxu0  ;;  %v2016_v0 = vpop.f32.mrf.mxu1 }
 0x58c   :  { %2563 = vmatpush.msra.mxu3 %v3223_v49 }
 0x58e   :  { %2564 = vmatpush.msra.mxu3 %v3224_v23  ;;  %v2011_v23 = vadd.f32 %v4617_v32, %v2010_v55 }
 0x590   :  { %v3242_v41 = vpop.permute.xlu2 %3241 }
 0x591   :  { %v3237_v12 = vpop.permute.xlu1 %3236  ;;  %v3232_v56 = vpop.permute.xlu0 %3231  ;;  %v3243_v18 = vunpack.i.l.bf16 %v3242_v41  ;;  %v3244_v54 = vunpack.i.h.bf16 %v3242_v41  ;;  %v2014_v41 = vadd.f32 %v4617_v32, %v2013_v13 }
 0x592   :  { %v3233_v27 = vunpack.i.l.bf16 %v3232_v56  ;;  %v3234_v22 = vunpack.i.h.bf16 %v3232_v56  ;;  %v3238_v63 = vunpack.i.l.bf16 %v3237_v12  ;;  %v3239_v17 = vunpack.i.h.bf16 %v3237_v12  ;;  %v1995_v56 = vpop.f32.mrf.mxu0 }
 0x594   :  { %2565 = vmatpush.msra.mxu3 %v3233_v27 }
 0x596   :  { %2566 = vmatpush.msra.mxu3 %v3234_v22 }
 0x598   :  { %2567 = vmatpush.msra.mxu3 %v3238_v63  ;;  %v2230_v25 = vpop.permute.xlu2 %2229 }
 0x599   :  { %v3252_v7 = vpop.permute.xlu1 %3251  ;;  %v3247_v61 = vpop.permute.xlu0 %3246  ;;  %v4625_v28 = vmul.f32 %v2230_v25, %v2038_v2 }
 0x59a   :  { %2568 = vmatpush.msra.mxu3 %v3239_v17  ;;  %v3248_v31 = vunpack.i.l.bf16 %v3247_v61  ;;  %v3249_v29 = vunpack.i.h.bf16 %v3247_v61  ;;  %v3253_v51 = vunpack.i.l.bf16 %v3252_v7  ;;  %v3254_v57 = vunpack.i.h.bf16 %v3252_v7 }
 0x59b   :  { %v2005_v61 = vadd.f32 %v4617_v32, %v4606_v59  ;;  %v1998_v59 = vpop.f32.mrf.mxu0 }
 0x59c   :  { %2569 = vmatpush.msra.mxu3 %v3243_v18  ;;  %v2008_v18 = vadd.f32 %v4617_v32, %v4612_v3  ;;  %v1999_v13 = vadd.f32 %v4617_v32, %v1998_v59 }
 0x59e   :  { %2570 = vmatpush.msra.mxu3 %v3244_v54 }
 0x5a0   :  { %2571 = vmatpush.msra.mxu3 %v3248_v31  ;;  %v2215_v42 = vpop.permute.xlu2 %2214  ;;  %v1993_v31 = vadd.f32 %v4617_v32, %v1992_v40 }
 0x5a1   :  { %v2220_v58 = vpop.permute.xlu1 %2219  ;;  %v4623_v52 = vmul.f32 %v2215_v42, %v2029_v33  ;;  %v2225_v45 = vpop.permute.xlu0 %2224  ;;  %v1996_v42 = vadd.f32 %v4617_v32, %v1995_v56  ;;  %v3204_v56 = vunpack.i.h.bf16 %v4604_v11 }
 0x5a2   :  { %v4627_v4 = vmul.f32 %v2220_v58, %v2032_v24  ;;  %v4629_v30 = vmul.f32 %v2225_v45, %v2035_v46  ;;  %2572 = vmatpush.msra.mxu3 %v3249_v29  ;;  %v2002_v29 = vadd.f32 %v4617_v32, %v4597_v43 }
 0x5a4   :  { %2573 = vmatpush.msra.mxu3 %v3253_v51  ;;  %v4633_v48 = vpack.i.bf16 %v4623_v52, %v4627_v4  ;;  %v4637_v9 = vpack.i.bf16 %v4629_v30, %v4625_v28 }
 0x5a6   :  { %3261 = vrot.lane.b32.xlu1 %v4633_v48, %s3414_s9  ;;  %3256 = vrot.lane.b32.xlu0 %v4637_v9, %s3414_s9 }
 0x5a7   :  { %2574 = vmatpush.msra.mxu3 %v3254_v57 }
 0x5a8   :  { %2575 = vmatmul.f32.vlgmr.msra.gmra.mxu3 %v4320_v26  ;;  %v2200_v14 = vpop.permute.xlu2 %2199  ;;  %v2017_v26 = vadd.f32 %v4617_v32, %v2016_v0  ;;  %v2264_v32 = vld [vmem:[%s4822_s7] sm:$0xff]  ;;  %v3184_v0 = vunpack.i.h.bf16 %v4587_v8 }
 0x5a9   :  { %v2205_v20 = vpop.permute.xlu1 %2204  ;;  %v2210_v36 = vpop.permute.xlu0 %2209  ;;  %v4662_v17 = vmul.f32 %v2200_v14, %v2020_v47  ;;  %2730 = vmatpush.msrb.mxu3 %v2265_v1  ;;  %2414 = vmatpush.msrb.mxu1 %v2264_v32  ;;  %v3189_v47 = vunpack.i.h.bf16 %v4601_v34 }
 0x5aa   :  { %v4648_v21 = vmul.f32 %v2205_v20, %v2023_v37  ;;  %v4650_v49 = vmul.f32 %v2210_v36, %v2026_v16  ;;  %v3179_v20 = vunpack.i.h.bf16 %v4589_v44  ;;  %v3183_v36 = vunpack.i.l.bf16 %v4587_v8 }
 0x5ab   :  { %2753 = vmatpush.msra.mxu3 %v2264_v32  ;;  %v3199_v8 = vunpack.i.h.bf16 %v4595_v35  ;;  %v4753_v32 = vld [vmem:[%s4822_s7 + $0x10] sm:$0xff] }
 0x5ac   :  { %v3265_v6 = vpack.i.bf16 %v4648_v21, %v4650_v49  ;;  %2505 = vmatpush.msrb.mxu2 %v4753_v32 }
 0x5ae   :  { %3266 = vrot.lane.b32.xlu2 %v3265_v6, %s3414_s9 }
 0x5b0   :  { %v2185_v12 = vpop.permute.xlu2 %2184 }
 0x5b1   :  { %v2190_v27 = vpop.permute.xlu1 %2189  ;;  %v4660_v22 = vmul.f32 %v2185_v12, %v2011_v23  ;;  %v2195_v63 = vpop.permute.xlu0 %2194  ;;  %v3203_v12 = vunpack.i.l.bf16 %v4604_v11 }
 0x5b2   :  { %v4664_v25 = vmul.f32 %v2190_v27, %v2014_v41  ;;  %v4666_v55 = vmul.f32 %v2195_v63, %v2017_v26  ;;  %v2286_v23 = vpop.f32.mrf.mxu2  ;;  %v3193_v41 = vunpack.i.l.bf16 %v4599_v19  ;;  %v3198_v26 = vunpack.i.l.bf16 %v4595_v35 }
 0x5b3   :  { %v3219_v27 = vunpack.i.h.bf16 %v4610_v50 }
 0x5b4   :  { %v3275_v15 = vpack.i.bf16 %v4660_v22, %v4664_v25  ;;  %v3270_v7 = vpack.i.bf16 %v4666_v55, %v4662_v17 }
 0x5b6   :  { %3276 = vrot.lane.b32.xlu1 %v3275_v15, %s3414_s9  ;;  %3271 = vrot.lane.b32.xlu0 %v3270_v7, %s3414_s9 }
 0x5b8   :  { %v2170_v54 = vpop.permute.xlu2 %2169 }
 0x5b9   :  { %v2175_v33 = vpop.permute.xlu1 %2174  ;;  %v2180_v24 = vpop.permute.xlu0 %2179  ;;  %v4697_v37 = vmul.f32 %v2170_v54, %v2002_v29 }
 0x5ba   :  { %v4681_v46 = vmul.f32 %v2175_v33, %v2005_v61  ;;  %v4683_v2 = vmul.f32 %v2180_v24, %v2008_v18 }
 0x5bc   :  { %v3280_v3 = vpack.i.bf16 %v4681_v46, %v4683_v2 }
 0x5be   :  { %3286 = vrot.lane.b32.xlu1 %v4637_v9, %s3417_s23  ;;  %3281 = vrot.lane.b32.xlu2 %v3280_v3, %s3414_s9 }
 0x5c0   :  { %v2155_v58 = vpop.permute.xlu2 %2154 }
 0x5c1   :  { %v2160_v45 = vpop.permute.xlu1 %2159  ;;  %v4695_v51 = vmul.f32 %v2155_v58, %v1993_v31  ;;  %v2165_v57 = vpop.permute.xlu0 %2164 }
 0x5c2   :  { %v4699_v16 = vmul.f32 %v2160_v45, %v1996_v42  ;;  %v4701_v40 = vmul.f32 %v2165_v57, %v1999_v13 }
 0x5c4   :  { %v3290_v43 = vpack.i.bf16 %v4695_v51, %v4699_v16  ;;  %v3295_v14 = vpack.i.bf16 %v4701_v40, %v4697_v37 }
 0x5c6   :  { %3306 = vrot.lane.b32.xlu1 %v3265_v6, %s3417_s23  ;;  %3291 = vrot.lane.b32.xlu2 %v3290_v43, %s3414_s9 }
 0x5c7   :  { %3296 = vrot.lane.b32.xlu0 %v3295_v14, %s3414_s9 }
 0x5ce   :  { %3321 = vrot.lane.b32.xlu1 %v3280_v3, %s3417_s23  ;;  %3311 = vrot.lane.b32.xlu2 %v3270_v7, %s3417_s23 }
 0x5cf   :  { %3301 = vrot.lane.b32.xlu0 %v4633_v48, %s3417_s23 }
 0x5d6   :  { %3336 = vrot.lane.b32.xlu1 %v4637_v9, %s3420_s25  ;;  %3326 = vrot.lane.b32.xlu2 %v3295_v14, %s3417_s23 }
 0x5d7   :  { %3316 = vrot.lane.b32.xlu0 %v3275_v15, %s3417_s23 }
 0x5de   :  { %3351 = vrot.lane.b32.xlu1 %v3270_v7, %s3420_s25  ;;  %3341 = vrot.lane.b32.xlu2 %v4633_v48, %s3420_s25  ;;  %v3178_v48 = vunpack.i.l.bf16 %v4589_v44  ;;  %v3194_v44 = vunpack.i.h.bf16 %v4599_v19  ;;  %v3228_v19 = vunpack.i.l.bf16 %v4608_v10 }
 0x5df   :  { %3331 = vrot.lane.b32.xlu0 %v3290_v43, %s3417_s23 }
 0x5e6   :  { %3366 = vrot.lane.b32.xlu1 %v3295_v14, %s3420_s25  ;;  %3356 = vrot.lane.b32.xlu2 %v3275_v15, %s3420_s25  ;;  %v3229_v15 = vunpack.i.h.bf16 %v4608_v10 }
 0x5e7   :  { %3346 = vrot.lane.b32.xlu0 %v3265_v6, %s3420_s25  ;;  %v3188_v6 = vunpack.i.l.bf16 %v4601_v34  ;;  %v3218_v34 = vunpack.i.l.bf16 %v4610_v50 }
 0x5ee   :  { %3371 = vrot.lane.b32.xlu2 %v3290_v43, %s3420_s25 }
 0x5ef   :  { %3361 = vrot.lane.b32.xlu0 %v3280_v3, %s3420_s25 }
 0x601   :  { %v2370_v9 = vpop.f32.mrf.mxu3 }
 0x602   :  { %3099 = vmatmul.msk.f32.vlgmr.msra.gmra.mxu1 %vm220_vm2, %v2370_v9  ;;  %v2267_v9 = vld [vmem:[%s4822_s7 + $0x18] sm:$0xff] }
 0x603   :  { %2467 = vmatpush.msra.mxu1 %v3178_v48  ;;  %2597 = vmatpush.msra.mxu2 %v2267_v9 }
 0x605   :  { %2468 = vmatpush.msra.mxu1 %v3179_v20 }
 0x607   :  { %2469 = vmatpush.msra.mxu1 %v3183_v36 }
 0x608   :  { %v3267_v18 = vpop.permute.xlu2 %3266 }
 0x609   :  { %2470 = vmatpush.msra.mxu1 %v3184_v0  ;;  %v3268_v50 = vunpack.i.l.bf16 %v3267_v18  ;;  %v3269_v33 = vunpack.i.h.bf16 %v3267_v18 }
 0x60a   :  { %3100 = vmatmul.msk.f32.vlgmr.msrb.gmra.mxu1 %vm220_vm2, %v2286_v23  ;;  %v4909_v23 = vld [vmem:[#allocation9_spill] sm:$0xff] }
 0x60b   :  { %2471 = vmatpush.msra.mxu1 %v3188_v6 }
 0x60d   :  { %2472 = vmatpush.msra.mxu1 %v3189_v47  ;;  %v931_v47 = vsub.f32 %v4909_v23, %v4885_v62 }
 0x60f   :  { %2473 = vmatpush.msra.mxu1 %v3193_v41  ;;  %v4910_v41 = vld [vmem:[#allocation19_spill] sm:$0xff] }
 0x611   :  { %2474 = vmatpush.msra.mxu1 %v3194_v44  ;;  %v1319_v44 = vsub.f32 %v4910_v41, %v4885_v62 }
 0x613   :  { %2475 = vmatpush.msra.mxu1 %v3198_v26  ;;  %v4911_v26 = vld [vmem:[#allocation20_spill] sm:$0xff] }
 0x615   :  { %2476 = vmatpush.msra.mxu1 %v3199_v8  ;;  %v575_v8 = vsub.f32 %v4911_v26, %v4891_v39 }
 0x617   :  { %2477 = vmatpush.msra.mxu1 %v3203_v12 }
 0x618   :  { %v3257_v63 = vpop.permute.xlu0 %3256  ;;  %v3262_v7 = vpop.permute.xlu1 %3261 }
 0x619   :  { %2478 = vmatpush.msra.mxu1 %v3204_v56  ;;  %v3258_v35 = vunpack.i.l.bf16 %v3257_v63  ;;  %v3259_v11 = vunpack.i.h.bf16 %v3257_v63  ;;  %v3263_v61 = vunpack.i.l.bf16 %v3262_v7  ;;  %v3264_v1 = vunpack.i.h.bf16 %v3262_v7  ;;  %v3282_v3 = vpop.permute.xlu2 %3281  ;;  %v4912_v56 = vld [vmem:[#allocation12_spill] sm:$0xff] }
 0x61a   :  { %v3283_v29 = vunpack.i.l.bf16 %v3282_v3  ;;  %v3284_v42 = vunpack.i.h.bf16 %v3282_v3 }
 0x61b   :  { %2479 = vmatpush.msra.mxu1 %v3218_v34  ;;  %v963_v34 = vsub.f32 %v4912_v56, %v4891_v39 }
 0x61d   :  { %2480 = vmatpush.msra.mxu1 %v3219_v27  ;;  %v1327_v27 = vand.u32 2147483647, %v1319_v44 }
 0x61f   :  { %2481 = vmatpush.msra.mxu1 %v3228_v19  ;;  %v4913_v19 = vld [vmem:[#allocation23_spill] sm:$0xff] }
 0x621   :  { %2482 = vmatpush.msra.mxu1 %v3229_v15  ;;  %v3292_v45 = vpop.permute.xlu2 %3291 }
 0x622   :  { %2483 = vmatmul.f32.vlgmr.msra.gmra.mxu1 %v4351_v38  ;;  %v3293_v43 = vunpack.i.l.bf16 %v3292_v45  ;;  %v3294_v14 = vunpack.i.h.bf16 %v3292_v45 }
 0x623   :  { %2692 = vmatpush.msrb.mxu1 %v3258_v35  ;;  %v1335_v35 = vsub.f32 1.0, %v1327_v27 }
 0x625   :  { %2693 = vmatpush.msrb.mxu1 %v3259_v11 }
 0x627   :  { %2694 = vmatpush.msrb.mxu1 %v3263_v61 }
 0x628   :  { %v3272_v54 = vpop.permute.xlu0 %3271  ;;  %v3277_v10 = vpop.permute.xlu1 %3276 }
 0x629   :  { %2695 = vmatpush.msrb.mxu1 %v3264_v1  ;;  %v3273_v24 = vunpack.i.l.bf16 %v3272_v54  ;;  %v3274_v59 = vunpack.i.h.bf16 %v3272_v54  ;;  %v3278_v31 = vunpack.i.l.bf16 %v3277_v10  ;;  %v3279_v38 = vunpack.i.h.bf16 %v3277_v10 }
 0x62a   :  { %v1343_v1 = vmax.f32 %v1335_v35, 0.0 }
 0x62b   :  { %2696 = vmatpush.msrb.mxu1 %v3268_v50  ;;  %v2576_v12 = vpop.f32.mrf.mxu3 }
 0x62d   :  { %2697 = vmatpush.msrb.mxu1 %v3269_v33  ;;  %v4915_v33 = vld [vmem:[#allocation15_spill] sm:$0xff] }
 0x62f   :  { %2698 = vmatpush.msrb.mxu1 %v3273_v24  ;;  %v4916_v24 = vld [vmem:[#allocation26_spill] sm:$0xff] }
 0x630   :  { %v1383_v10 = vmul.f32 %v1343_v1, %v4916_v24 }
 0x631   :  { %2699 = vmatpush.msrb.mxu1 %v3274_v59 }
 0x633   :  { %2700 = vmatpush.msrb.mxu1 %v3278_v31 }
 0x635   :  { %2701 = vmatpush.msrb.mxu1 %v3279_v38 }
 0x637   :  { %2702 = vmatpush.msrb.mxu1 %v3283_v29  ;;  %v3287_v29 = vpop.permute.xlu1 %3286 }
 0x639   :  { %v3297_v13 = vpop.permute.xlu0 %3296  ;;  %2703 = vmatpush.msrb.mxu1 %v3284_v42  ;;  %v4917_v42 = vld [vmem:[#allocation39_spill] sm:$0xff] }
 0x63a   :  { %v3298_v58 = vunpack.i.l.bf16 %v3297_v13  ;;  %v3299_v57 = vunpack.i.h.bf16 %v3297_v13 }
 0x63c   :  { %2704 = vmatpush.msrb.mxu1 %v3298_v58  ;;  %v3288_v58 = vunpack.i.l.bf16 %v3287_v29 }
 0x63e   :  { %2705 = vmatpush.msrb.mxu1 %v3299_v57 }
 0x640   :  { %2706 = vmatpush.msrb.mxu1 %v3293_v43  ;;  %v3312_v43 = vpop.permute.xlu2 %3311 }
 0x642   :  { %2707 = vmatpush.msrb.mxu1 %v3294_v14 }
 0x643   :  { %2708 = vmatmul.f32.vlgmr.msrb.gmra.mxu1 %v4342_v60  ;;  %v4908_v60 = vld [vmem:[#allocation10_spill] sm:$0xff] }
 0x644   :  { %2936 = vmatpush.msra.mxu1 %v2267_v9  ;;  %v534_v6 = vsub.f32 %v4908_v60, %v4885_v62  ;;  %v1351_v62 = vsub.f32 %v4913_v19, %v4891_v39  ;;  %v3314_v9 = vunpack.i.h.bf16 %v3312_v43 }
 0x646   :  { %v1359_v11 = vand.u32 2147483647, %v1351_v62 }
 0x648   :  { %v1367_v39 = vsub.f32 1.0, %v1359_v11 }
 0x64a   :  { %v1375_v3 = vmax.f32 %v1367_v39, 0.0 }
 0x64c   :  { %v1391_v31 = vmul.f32 %v1383_v10, %v1375_v3 }
 0x67f   :  { %v2393_v48 = vpop.f32.mrf.mxu1 }
 0x687   :  { %v2416_v20 = vpop.f32.mrf.mxu1 }
 0x688   :  { %v4759_v36 = vadd.f32 %v2416_v20, %v2393_v48 }
 0x69f   :  { %v2484_v0 = vpop.f32.mrf.mxu1 }
 0x6a0   :  { %3101 = vmatmul.msk.f32.vlgmr.msrb.gmra.mxu2 %vm220_vm2, %v2484_v0 }
 0x6a1   :  { %2608 = vmatpush.msrb.mxu2 %v4625_v28  ;;  %v542_v28 = vand.u32 2147483647, %v534_v6  ;;  %v3327_v6 = vpop.permute.xlu2 %3326 }
 0x6a2   :  { %v3329_v44 = vunpack.i.h.bf16 %v3327_v6 }
 0x6a3   :  { %2609 = vmatpush.msrb.mxu2 %v4629_v30  ;;  %v939_v30 = vand.u32 2147483647, %v931_v47  ;;  %v550_v63 = vsub.f32 1.0, %v542_v28  ;;  %v3328_v47 = vunpack.i.l.bf16 %v3327_v6 }
 0x6a5   :  { %2610 = vmatpush.msrb.mxu2 %v4627_v4  ;;  %v583_v4 = vand.u32 2147483647, %v575_v8  ;;  %v947_v15 = vsub.f32 1.0, %v939_v30  ;;  %v4802_v30 = vld [vmem:[%s4823_s8] ss:$0 sm:$0xff]  ;;  %s3425_s8 = smov [#allocation2]  }
 0x6a6   :  { %s2948_s24 = sshll.u32 %s3425_s8, 4  ;;  %s2949_s24 = int_to_ptr.vmem [resolvable:$true] %s2948_s24 }
 0x6a7   :  { %2611 = vmatpush.msrb.mxu2 %v4623_v52  ;;  %v971_v52 = vand.u32 2147483647, %v963_v34  ;;  %v591_v7 = vsub.f32 1.0, %v583_v4  ;;  %v955_v61 = vmax.f32 %v947_v15, 0.0 }
 0x6a8   :  { %3102 = vmatmul.msk.f32.vlgmr.msra.gmra.mxu2 %vm220_vm2, %v2576_v12 }
 0x6a9   :  { %2612 = vmatpush.msrb.mxu2 %v4650_v49  ;;  %v558_v49 = vmax.f32 %v550_v63, 0.0  ;;  %v979_v18 = vsub.f32 1.0, %v971_v52  ;;  %v599_v50 = vmax.f32 %v591_v7, 0.0  ;;  %v3342_v63 = vpop.permute.xlu2 %3341 }
 0x6aa   :  { %v3344_v52 = vunpack.i.h.bf16 %v3342_v63 }
 0x6ab   :  { %2613 = vmatpush.msrb.mxu2 %v4648_v21  ;;  %v4914_v21 = vld [vmem:[#allocation6_spill] sm:$0xff]  ;;  %v987_v59 = vmax.f32 %v979_v18, 0.0 }
 0x6ac   :  { %v607_v54 = vmul.f32 %v558_v49, %v4914_v21 }
 0x6ad   :  { %2614 = vmatpush.msrb.mxu2 %v4662_v17  ;;  %v995_v17 = vmul.f32 %v955_v61, %v4915_v33 }
 0x6af   :  { %2615 = vmatpush.msrb.mxu2 %v4666_v55  ;;  %v615_v55 = vmul.f32 %v607_v54, %v599_v50 }
 0x6b1   :  { %2616 = vmatpush.msrb.mxu2 %v4664_v25  ;;  %v1003_v25 = vmul.f32 %v995_v17, %v987_v59  ;;  %v3357_v61 = vpop.permute.xlu2 %3356 }
 0x6b2   :  { %v3358_v1 = vunpack.i.l.bf16 %v3357_v61  ;;  %v3359_v39 = vunpack.i.h.bf16 %v3357_v61 }
 0x6b3   :  { %2617 = vmatpush.msrb.mxu2 %v4660_v22  ;;  %v1011_v38 = vadd.f32 %v1003_v25, %v615_v55 }
 0x6b5   :  { %2618 = vmatpush.msrb.mxu2 %v4683_v2  ;;  %v1399_v22 = vadd.f32 %v1391_v31, %v1011_v38  ;;  %v3302_v2 = vpop.permute.xlu0 %3301 }
 0x6b6   :  { %v3304_v57 = vunpack.i.h.bf16 %v3302_v2 }
 0x6b7   :  { %2619 = vmatpush.msrb.mxu2 %v4681_v46  ;;  %v1787_v13 = vadd.f32 %v4917_v42, %v1399_v22  ;;  %v3289_v46 = vunpack.i.h.bf16 %v3287_v29 }
 0x6b9   :  { %2620 = vmatpush.msrb.mxu2 %v4697_v37  ;;  %v3303_v37 = vunpack.i.l.bf16 %v3302_v2  ;;  %v3372_v24 = vpop.permute.xlu2 %3371 }
 0x6ba   :  { %v3373_v59 = vunpack.i.l.bf16 %v3372_v24  ;;  %v3374_v55 = vunpack.i.h.bf16 %v3372_v24 }
 0x6bb   :  { %2621 = vmatpush.msrb.mxu2 %v4701_v40  ;;  %v3307_v40 = vpop.permute.xlu1 %3306 }
 0x6bc   :  { %v3309_v14 = vunpack.i.h.bf16 %v3307_v40 }
 0x6bd   :  { %2622 = vmatpush.msrb.mxu2 %v4699_v16  ;;  %v3308_v16 = vunpack.i.l.bf16 %v3307_v40  ;;  %v3317_v48 = vpop.permute.xlu0 %3316 }
 0x6be   :  { %v3318_v20 = vunpack.i.l.bf16 %v3317_v48  ;;  %v3319_v60 = vunpack.i.h.bf16 %v3317_v48 }
 0x6bf   :  { %2623 = vmatpush.msrb.mxu2 %v4695_v51  ;;  %v3313_v51 = vunpack.i.l.bf16 %v3312_v43 }
 0x6c0   :  { %2624 = vmatmul.f32.vlgmr.msrb.gmra.mxu2 %v1787_v13  ;;  %v2709_v45 = vpop.f32.mrf.mxu1 }
 0x6c1   :  { %2806 = vmatpush.msra.mxu2 %v3288_v58  ;;  %3103 = vmatmul.msk.f32.vlgmr.msrb.gmra.mxu3 %vm220_vm2, %v2709_v45 }
 0x6c2   :  { %2844 = vmatpush.msrb.mxu3 %v4753_v32 }
 0x6c3   :  { %2807 = vmatpush.msra.mxu2 %v3289_v46  ;;  %v3322_v0 = vpop.permute.xlu1 %3321 }
 0x6c4   :  { %v3323_v32 = vunpack.i.l.bf16 %v3322_v0  ;;  %v3324_v23 = vunpack.i.h.bf16 %v3322_v0 }
 0x6c5   :  { %2808 = vmatpush.msra.mxu2 %v3303_v37  ;;  %v3332_v41 = vpop.permute.xlu0 %3331 }
 0x6c6   :  { %v3333_v26 = vunpack.i.l.bf16 %v3332_v41  ;;  %v3334_v8 = vunpack.i.h.bf16 %v3332_v41 }
 0x6c7   :  { %2809 = vmatpush.msra.mxu2 %v3304_v57 }
 0x6c9   :  { %2810 = vmatpush.msra.mxu2 %v3308_v16 }
 0x6cb   :  { %2811 = vmatpush.msra.mxu2 %v3309_v14  ;;  %v3337_v4 = vpop.permute.xlu1 %3336 }
 0x6cc   :  { %v3338_v19 = vunpack.i.l.bf16 %v3337_v4 }
 0x6cd   :  { %2812 = vmatpush.msra.mxu2 %v3313_v51  ;;  %v3347_v15 = vpop.permute.xlu0 %3346 }
 0x6ce   :  { %v3348_v35 = vunpack.i.l.bf16 %v3347_v15  ;;  %v3349_v11 = vunpack.i.h.bf16 %v3347_v15 }
 0x6cf   :  { %2813 = vmatpush.msra.mxu2 %v3314_v9 }
 0x6d1   :  { %2814 = vmatpush.msra.mxu2 %v3318_v20 }
 0x6d3   :  { %2815 = vmatpush.msra.mxu2 %v3319_v60  ;;  %v3352_v7 = vpop.permute.xlu1 %3351 }
 0x6d4   :  { %v3353_v49 = vunpack.i.l.bf16 %v3352_v7  ;;  %v3354_v18 = vunpack.i.h.bf16 %v3352_v7 }
 0x6d5   :  { %2816 = vmatpush.msra.mxu2 %v3323_v32  ;;  %v3362_v50 = vpop.permute.xlu0 %3361 }
 0x6d6   :  { %v3363_v21 = vunpack.i.l.bf16 %v3362_v50  ;;  %v3364_v33 = vunpack.i.h.bf16 %v3362_v50 }
 0x6d7   :  { %2817 = vmatpush.msra.mxu2 %v3324_v23 }
 0x6d9   :  { %2818 = vmatpush.msra.mxu2 %v3328_v47 }
 0x6db   :  { %2819 = vmatpush.msra.mxu2 %v3329_v44  ;;  %v3367_v54 = vpop.permute.xlu1 %3366 }
 0x6dc   :  { %v3368_v17 = vunpack.i.l.bf16 %v3367_v54  ;;  %v3369_v10 = vunpack.i.h.bf16 %v3367_v54 }
 0x6dd   :  { %2820 = vmatpush.msra.mxu2 %v3333_v26 }
 0x6df   :  { %2821 = vmatpush.msra.mxu2 %v3334_v8 }
 0x6e0   :  { %2822 = vmatmul.f32.vlgmr.msra.gmra.mxu2 %v4377_v5  ;;  %v3339_v5 = vunpack.i.h.bf16 %v3337_v4 }
 0x723   :  { %v2507_v12 = vpop.f32.mrf.mxu2 }
 0x724   :  { %v2510_v28 = vadd.f32 %v2507_v12, %v4759_v36  ;;  %v3343_v36 = vunpack.i.l.bf16 %v3342_v63 }
 0x72b   :  { %v2599_v56 = vpop.f32.mrf.mxu2 }
 0x72c   :  { %v2602_v34 = vadd.f32 %v2599_v56, %v2510_v28 }
 0x72e   :  { %v2606_v27 = vadd.f32 %v4802_v30, %v2602_v34 }
 0x730   :  { %2607 = vst.msk [vmem:[#allocation2] sm:$0xff] %vm113_vm4, %v2606_v27 }
 0x743   :  { %v2625_v62 = vpop.f32.mrf.mxu2 }
 0x744   :  { %3104 = vmatmul.msk.f32.vlgmr.msra.gmra.mxu3 %vm220_vm2, %v2625_v62  ;;  %v2732_v25 = vpop.f32.mrf.mxu3 }
 0x745   :  { %2898 = vmatpush.msra.mxu3 %v3338_v19 }
 0x747   :  { %2899 = vmatpush.msra.mxu3 %v3339_v5 }
 0x749   :  { %2900 = vmatpush.msra.mxu3 %v3343_v36 }
 0x74b   :  { %2901 = vmatpush.msra.mxu3 %v3344_v52 }
 0x74d   :  { %2902 = vmatpush.msra.mxu3 %v3348_v35 }
 0x74f   :  { %2903 = vmatpush.msra.mxu3 %v3349_v11 }
 0x751   :  { %2904 = vmatpush.msra.mxu3 %v3353_v49 }
 0x753   :  { %2905 = vmatpush.msra.mxu3 %v3354_v18 }
 0x755   :  { %2906 = vmatpush.msra.mxu3 %v3358_v1 }
 0x757   :  { %2907 = vmatpush.msra.mxu3 %v3359_v39 }
 0x759   :  { %2908 = vmatpush.msra.mxu3 %v3363_v21 }
 0x75b   :  { %2909 = vmatpush.msra.mxu3 %v3364_v33 }
 0x75d   :  { %2910 = vmatpush.msra.mxu3 %v3368_v17 }
 0x75f   :  { %2911 = vmatpush.msra.mxu3 %v3369_v10 }
 0x761   :  { %2912 = vmatpush.msra.mxu3 %v3373_v59 }
 0x763   :  { %v2823_v3 = vpop.f32.mrf.mxu2  ;;  %2913 = vmatpush.msra.mxu3 %v3374_v55 }
 0x764   :  { %3105 = vmatmul.msk.f32.vlgmr.msrb.gmra.mxu3 %vm220_vm2, %v2823_v3 }
 0x76c   :  { %2914 = vmatmul.f32.vlgmr.msra.gmra.mxu3 %v4336_v53 }
 0x7c7   :  { %v2755_v31 = vpop.f32.mrf.mxu3 }
 0x7c8   :  { %v2756_v38 = vadd.f32 %v2755_v31, %v2732_v25 }
 0x7e7   :  { %v2846_v29 = vpop.f32.mrf.mxu3 }
 0x7e8   :  { %v2849_v22 = vadd.f32 %v2846_v29, %v2756_v38 }
 0x7ef   :  { %v2915_v42 = vpop.f32.mrf.mxu3 }
 0x7f0   :  { %3106 = vmatmul.msk.f32.vlgmr.msra.gmra.mxu1 %vm220_vm2, %v2915_v42 }
 0x86d   :  { %v2938_v13 = vpop.f32.mrf.mxu1 }
 0x86e   :  { %v2941_v58 = vadd.f32 %v2938_v13, %v2849_v22 }
 0x870   :  { %v2942_v53 = vadd.f32 %v4802_v30, %v2941_v58 }
 0x872   :  { %2943 = vst.msk [vmem:[#allocation2 + $0x8] sm:$0xff] %vm113_vm4, %v2942_v53 }
 0x873   :  { %2956 = dma.vmem_to_hbm [thread:$0]  %s2949_s24, 256, %s2951_s27, [#allocation3], %s3426_s4, %s3426_s4, %s3427_s28  }
 0x874   :  { %3411 = dma.done.wait [#allocation3], 256  }
 0x875   :  { %3412 = vsyncadd [#allocation3], 4294967040 }
 0x876   :  { %2961 = vsyncpa [#allocation3], 1 }

</bundles_post_ra>
